<compile_context>
chip_gen: v5e
topology: v5e:2x2
jax: 0.10.0
libtpu: 0.0.40
codegen_flags: <defaults>
</compile_context>

<pallas_src>
import functools

import jax
import jax.numpy as jnp
from jax import lax
from jax.experimental import pallas as pl
from jax.experimental.pallas import tpu as pltpu

EPS = 1e-5
NEG_INF = -1e30


def _layernorm(x, g, b):
    mu = jnp.mean(x, axis=-1, keepdims=True)
    var = jnp.mean((x - mu) ** 2, axis=-1, keepdims=True)
    return (x - mu) * lax.rsqrt(var + EPS) * g + b


# ----------------------------------------------------------------------------
# Fused GPT kernel: embedding + all transformer blocks + final LN + LM head.
# One grid step == one batch element (grid=(B,), "parallel" for v7x 2 TCs).
# ----------------------------------------------------------------------------
def gpt_kernel(idx_ref, tokemb_ref, posemb_ref,
               ln1g_ref, ln1b_ref, wq_ref, wk_ref, wvp_ref,
               ln2g_ref, ln2b_ref, w1_ref, b1_ref, w2_ref, b2_ref,
               lnfg_ref, lnfb_ref, wh_ref, bh_ref,
               o_ref, *, n_layers, n_heads, seq):
    T = seq
    Vp, E = tokemb_ref.shape
    bf16 = jnp.bfloat16

    # ---- fused embedding: one-hot token gather on the MXU + positional add ----
    ids = idx_ref[...]                                         # (T, 1) int32
    col = lax.broadcasted_iota(jnp.int32, (T, Vp), 1)
    onehot = (col == ids).astype(jnp.float32)                  # (T, Vp)
    tok = jnp.dot(onehot, tokemb_ref[...],
                  preferred_element_type=jnp.float32)          # exact gather, (T, E)
    x = tok + posemb_ref[pl.ds(0, T), :]                       # (T, E) float32

    # Causal additive bias, built once and reused by every layer / head.
    row = lax.broadcasted_iota(jnp.int32, (T, T), 0)
    cc = lax.broadcasted_iota(jnp.int32, (T, T), 1)
    bias = jnp.where(cc <= row, 0.0, NEG_INF).astype(jnp.float32)   # (T, T)

    for l in range(n_layers):                                  # static unroll (small L)
        # ---- multi-head causal self-attention on ln1(x) ----
        ln1 = _layernorm(x, ln1g_ref[l], ln1b_ref[l])
        ln1h = jnp.broadcast_to(ln1.astype(bf16), (n_heads, T, E))   # (nh, T, E)

        # head-major projections (leading-batch einsums, scale folded in Wq)
        q = jnp.einsum('hte,hed->htd', ln1h, wq_ref[l],
                       preferred_element_type=jnp.float32)     # (nh, T, hs)
        k = jnp.einsum('hte,hed->htd', ln1h, wk_ref[l],
                       preferred_element_type=jnp.float32)     # (nh, T, hs)
        # V projected directly into each head's lane range (zeros elsewhere)
        v = jnp.einsum('hte,hef->htf', ln1h, wvp_ref[l],
                       preferred_element_type=jnp.float32)     # (nh, T, E)

        s = jnp.einsum('hqd,hkd->hqk', q.astype(bf16), k.astype(bf16),
                       preferred_element_type=jnp.float32) + bias    # (nh, T, T)
        s = s - jnp.max(s, axis=-1, keepdims=True)
        p = jnp.exp(s)
        p = p * pl.reciprocal(jnp.sum(p, axis=-1, keepdims=True), approx=True)
        # attention dropout: identity in eval mode
        oh = jnp.einsum('hqk,hke->hqe', p.astype(bf16), v.astype(bf16),
                        preferred_element_type=jnp.float32)    # (nh, T, E)
        # per-head outputs occupy disjoint lane ranges -> sum == concat
        x = x + jnp.sum(oh, axis=0)

        # ---- feed-forward on ln2(x) ----
        ln2 = _layernorm(x, ln2g_ref[l], ln2b_ref[l])
        h1 = jnp.dot(ln2.astype(bf16), w1_ref[l],
                     preferred_element_type=jnp.float32) + b1_ref[l]
        h1 = jnp.maximum(h1, 0.0)
        ff = jnp.dot(h1.astype(bf16), w2_ref[l],
                     preferred_element_type=jnp.float32) + b2_ref[l]
        # ff dropout: identity in eval mode
        x = x + ff

    # ---- final LayerNorm + LM head (vocab padded to 128 lanes: dense store) ----
    lnf = _layernorm(x, lnfg_ref[...], lnfb_ref[...])
    o_ref[...] = jnp.dot(lnf.astype(bf16), wh_ref[...],
                         preferred_element_type=jnp.float32) + bh_ref[...]


# ----------------------------------------------------------------------------
# Wrapper: single pallas_call over a parallel batch grid + logits un-padding
# ----------------------------------------------------------------------------
def gpt_forward(params, idx, *, vocab_size, n_heads=4):
    B, T = idx.shape
    Vp, E = params["token_embed"].shape
    L = params["ln1_g"].shape[0]
    BT = B * T
    hs = E // n_heads

    idx2d = idx.reshape(BT, 1).astype(jnp.int32)

    operands = (
        idx2d, params["token_embed"], params["pos_embed"],
        params["ln1_g"], params["ln1_b"],
        params["wq_h"], params["wk_h"], params["wv_placed"],
        params["ln2_g"], params["ln2_b"],
        params["w1"], params["b1"], params["w2"], params["b2"],
        params["lnf_g"], params["lnf_b"], params["w_head"], params["b_head"],
    )

    def resident(shape):                      # full block, same block every step
        rank = len(shape)
        return pl.BlockSpec(tuple(shape), lambda b, _r=rank: (0,) * _r)

    in_specs = [pl.BlockSpec((T, 1), lambda b: (b, 0))]        # idx rows of batch b
    in_specs += [resident(op.shape) for op in operands[1:]]
    out_specs = pl.BlockSpec((T, Vp), lambda b: (b, 0))        # lane-dense (8,128) slab

    # rough cost hint for XLA scheduling around the custom call
    per_layer = (2 * 2 * n_heads * T * E * hs          # Q, K projections
                 + 2 * n_heads * T * E * E             # placed-V projection
                 + 2 * n_heads * T * T * hs            # scores
                 + 2 * n_heads * T * T * E             # PV
                 + 2 * 2 * T * E * 4 * E)              # FF1 + FF2
    flops = B * (2 * T * Vp * E + L * per_layer + 2 * T * E * Vp)
    transcendentals = B * (L * (n_heads * T * T + n_heads * T + 2 * T) + T)
    bytes_accessed = int(sum(int(op.nbytes) for op in operands) + BT * Vp * 4)

    kernel = functools.partial(gpt_kernel, n_layers=L, n_heads=n_heads, seq=T)

    logits_flat = pl.pallas_call(
        kernel,
        out_shape=jax.ShapeDtypeStruct((BT, Vp), jnp.float32),
        grid=(B,),
        in_specs=in_specs,
        out_specs=out_specs,
        # NOTE: at larger BT / vocab, tile BT rows and the vocab dim and set
        # vmem_limit_bytes explicitly (64 MiB on v7x vs 128 MiB on v5e/v6e).
        compiler_params=pltpu.CompilerParams(dimension_semantics=("parallel",)),
        cost_estimate=pl.CostEstimate(flops=int(flops),
                                      transcendentals=int(transcendentals),
                                      bytes_accessed=bytes_accessed),
    )(*operands)

    logits = logits_flat.reshape(B, T, Vp)[:, :, :vocab_size]  # drop lane padding
    # TODO(synk): cross-entropy loss path (targets != None) not implemented;
    # forward with targets=None returns (logits, None) as in the reference.
    return logits, None


# ----------------------------------------------------------------------------
# Parameter init (deterministic, synthetic), pre-transformed for the kernel:
#   * wq_h / wk_h : (L, nh, E, hs) head-major; attention scale folded into wq_h
#   * wv_placed   : (L, nh, E, E) V weights placed into each head's lane range
#   * big matmul weights stored bf16; LN params / biases / embeddings stay f32
# ----------------------------------------------------------------------------
def init_params(key, vocab_size, block_size, embed_size=64, n_layers=2, n_heads=4):
    Vp = ((vocab_size + 127) // 128) * 128           # pad vocab to lane-dense width
    hs = embed_size // n_heads
    scale = 1.0 / (embed_size ** 0.5)                # 1/8: exact power-of-two fold
    kit = iter(jax.random.split(key, 3 + 5 * n_layers))
    nrm = lambda k, shape, s=0.02: (s * jax.random.normal(k, shape)).astype(jnp.float32)

    tok = jnp.zeros((Vp, embed_size), jnp.float32)
    tok = tok.at[:vocab_size].set(nrm(next(kit), (vocab_size, embed_size)))

    w_head = jnp.zeros((embed_size, Vp), jnp.float32)
    w_head = w_head.at[:, :vocab_size].set(nrm(next(kit), (embed_size, vocab_size)))

    params = {
        "token_embed": tok,                                       # (Vp, E) f32
        "pos_embed": nrm(next(kit), (block_size, embed_size)),    # (block, E) f32
        "lnf_g": jnp.ones((1, embed_size), jnp.float32),
        "lnf_b": jnp.zeros((1, embed_size), jnp.float32),
        "w_head": w_head.astype(jnp.bfloat16),                    # (E, Vp) bf16
        "b_head": jnp.zeros((1, Vp), jnp.float32),
        "ln1_g": jnp.ones((n_layers, 1, embed_size), jnp.float32),
        "ln1_b": jnp.zeros((n_layers, 1, embed_size), jnp.float32),
        "ln2_g": jnp.ones((n_layers, 1, embed_size), jnp.float32),
        "ln2_b": jnp.zeros((n_layers, 1, embed_size), jnp.float32),
        "b1": jnp.zeros((n_layers, 1, 4 * embed_size), jnp.float32),
        "b2": jnp.zeros((n_layers, 1, embed_size), jnp.float32),
    }

    wq_l, wk_l, wvp_l, w1_l, w2_l = [], [], [], [], []
    for _ in range(n_layers):
        wq = nrm(next(kit), (embed_size, embed_size)) * scale     # scale folded here
        wk = nrm(next(kit), (embed_size, embed_size))
        wv = nrm(next(kit), (embed_size, embed_size))
        # head-major (nh, E, hs): leading-batch einsums, no in-kernel lane slicing
        wq_l.append(wq.reshape(embed_size, n_heads, hs).transpose(1, 0, 2))
        wk_l.append(wk.reshape(embed_size, n_heads, hs).transpose(1, 0, 2))
        # V with outputs pre-placed in each head's lane range: head concat == sum
        wvp = jnp.zeros((n_heads, embed_size, embed_size), jnp.float32)
        for h in range(n_heads):
            wvp = wvp.at[h, :, h * hs:(h + 1) * hs].set(wv[:, h * hs:(h + 1) * hs])
        wvp_l.append(wvp)
        w1_l.append(nrm(next(kit), (embed_size, 4 * embed_size)))
        w2_l.append(nrm(next(kit), (4 * embed_size, embed_size)))

    params["wq_h"] = jnp.stack(wq_l).astype(jnp.bfloat16)         # (L, nh, E, hs)
    params["wk_h"] = jnp.stack(wk_l).astype(jnp.bfloat16)         # (L, nh, E, hs)
    params["wv_placed"] = jnp.stack(wvp_l).astype(jnp.bfloat16)   # (L, nh, E, E)
    params["w1"] = jnp.stack(w1_l).astype(jnp.bfloat16)           # (L, E, 4E)
    params["w2"] = jnp.stack(w2_l).astype(jnp.bfloat16)           # (L, 4E, E)
    return params


if __name__ == "__main__":
    vocab_size = 65
    block_size = 16
    embed_size = 64
    n_layers = 2
    n_heads = 4
    B, T = 2, 8

    key = jax.random.PRNGKey(0)
    pkey, ikey = jax.random.split(key)
    params = init_params(pkey, vocab_size, block_size, embed_size, n_layers, n_heads)
    idx = jax.random.randint(ikey, (B, T), 0, vocab_size, dtype=jnp.int32)

    logits, loss = gpt_forward(params, idx, vocab_size=vocab_size, n_heads=n_heads)
    logits = jax.block_until_ready(logits)
    assert logits.shape == (B, T, vocab_size), logits.shape
    assert loss is None
    assert bool(jnp.all(jnp.isfinite(logits)))
    print("KERNEL_OK")
</pallas_src>

<mosaic_0001>
module attributes {stable_mosaic.version = 11 : i64} {
  func.func @gpt_kernel(%arg0: i32, %arg1: memref<8x1xi32, #tpu.memory_space<vmem>>, %arg2: memref<128x64xf32, #tpu.memory_space<vmem>>, %arg3: memref<16x64xf32, #tpu.memory_space<vmem>>, %arg4: memref<2x1x64xf32, #tpu.memory_space<vmem>>, %arg5: memref<2x1x64xf32, #tpu.memory_space<vmem>>, %arg6: memref<2x4x64x16xbf16, #tpu.memory_space<vmem>>, %arg7: memref<2x4x64x16xbf16, #tpu.memory_space<vmem>>, %arg8: memref<2x4x64x64xbf16, #tpu.memory_space<vmem>>, %arg9: memref<2x1x64xf32, #tpu.memory_space<vmem>>, %arg10: memref<2x1x64xf32, #tpu.memory_space<vmem>>, %arg11: memref<2x64x256xbf16, #tpu.memory_space<vmem>>, %arg12: memref<2x1x256xf32, #tpu.memory_space<vmem>>, %arg13: memref<2x256x64xbf16, #tpu.memory_space<vmem>>, %arg14: memref<2x1x64xf32, #tpu.memory_space<vmem>>, %arg15: memref<1x64xf32, #tpu.memory_space<vmem>>, %arg16: memref<1x64xf32, #tpu.memory_space<vmem>>, %arg17: memref<64x128xbf16, #tpu.memory_space<vmem>>, %arg18: memref<1x128xf32, #tpu.memory_space<vmem>>, %arg19: memref<8x128xf32, #tpu.memory_space<vmem>>) attributes {dimension_semantics = [#tpu.dimension_semantics<parallel>], iteration_bounds = array<i64: 2>, scalar_prefetch = 0 : i64, scratch_operands = 0 : i64, tpu.core_type = #tpu.core_type<tc>, window_params = [{transform_indices = @transform_0, window_bounds = array<i64: 8, 1>}, {pipeline_mode = #tpu.pipeline_mode<synchronous>, transform_indices = @transform_1, window_bounds = array<i64: 128, 64>}, {pipeline_mode = #tpu.pipeline_mode<synchronous>, transform_indices = @transform_2, window_bounds = array<i64: 16, 64>}, {pipeline_mode = #tpu.pipeline_mode<synchronous>, transform_indices = @transform_3, window_bounds = array<i64: 2, 1, 64>}, {pipeline_mode = #tpu.pipeline_mode<synchronous>, transform_indices = @transform_4, window_bounds = array<i64: 2, 1, 64>}, {pipeline_mode = #tpu.pipeline_mode<synchronous>, transform_indices = @transform_5, window_bounds = array<i64: 2, 4, 64, 16>}, {pipeline_mode = #tpu.pipeline_mode<synchronous>, transform_indices = @transform_6, window_bounds = array<i64: 2, 4, 64, 16>}, {pipeline_mode = #tpu.pipeline_mode<synchronous>, transform_indices = @transform_7, window_bounds = array<i64: 2, 4, 64, 64>}, {pipeline_mode = #tpu.pipeline_mode<synchronous>, transform_indices = @transform_8, window_bounds = array<i64: 2, 1, 64>}, {pipeline_mode = #tpu.pipeline_mode<synchronous>, transform_indices = @transform_9, window_bounds = array<i64: 2, 1, 64>}, {pipeline_mode = #tpu.pipeline_mode<synchronous>, transform_indices = @transform_10, window_bounds = array<i64: 2, 64, 256>}, {pipeline_mode = #tpu.pipeline_mode<synchronous>, transform_indices = @transform_11, window_bounds = array<i64: 2, 1, 256>}, {pipeline_mode = #tpu.pipeline_mode<synchronous>, transform_indices = @transform_12, window_bounds = array<i64: 2, 256, 64>}, {pipeline_mode = #tpu.pipeline_mode<synchronous>, transform_indices = @transform_13, window_bounds = array<i64: 2, 1, 64>}, {pipeline_mode = #tpu.pipeline_mode<synchronous>, transform_indices = @transform_14, window_bounds = array<i64: 1, 64>}, {pipeline_mode = #tpu.pipeline_mode<synchronous>, transform_indices = @transform_15, window_bounds = array<i64: 1, 64>}, {pipeline_mode = #tpu.pipeline_mode<synchronous>, transform_indices = @transform_16, window_bounds = array<i64: 64, 128>}, {pipeline_mode = #tpu.pipeline_mode<synchronous>, transform_indices = @transform_17, window_bounds = array<i64: 1, 128>}, {transform_indices = @transform_18, window_bounds = array<i64: 8, 128>}]} {
    %c0 = arith.constant 0 : index
    %c0_0 = arith.constant 0 : index
    %0 = vector.load %arg1[%c0, %c0_0] : memref<8x1xi32, #tpu.memory_space<vmem>>, vector<8x1xi32>
    %1 = tpu.iota {dimensions = array<i32: 1>} : vector<8x128xi32>
    %2 = vector.broadcast %0 : vector<8x1xi32> to vector<8x128xi32>
    %3 = arith.cmpi eq, %1, %2 : vector<8x128xi32>
    %4 = arith.extui %3 : vector<8x128xi1> to vector<8x128xi32>
    %5 = arith.sitofp %4 : vector<8x128xi32> to vector<8x128xf32>
    %c0_1 = arith.constant 0 : index
    %c0_2 = arith.constant 0 : index
    %6 = vector.load %arg2[%c0_1, %c0_2] : memref<128x64xf32, #tpu.memory_space<vmem>>, vector<128x64xf32>
    %cst = arith.constant dense<0.000000e+00> : vector<8x64xf32>
    %7 = tpu.matmul %5, %6, %cst {dimension_numbers = #tpu.dot_dimension_numbers<[1], [0], [0], [1], [0, 0, 1, 1], [], []>} : vector<8x128xf32>, vector<128x64xf32>, vector<8x64xf32> -> vector<8x64xf32>
    %c0_3 = arith.constant 0 : index
    %c0_4 = arith.constant 0 : index
    %8 = vector.load %arg3[%c0_3, %c0_4] : memref<16x64xf32, #tpu.memory_space<vmem>>, vector<8x64xf32>
    %9 = arith.addf %7, %8 : vector<8x64xf32>
    %10 = tpu.iota {dimensions = array<i32: 0>} : vector<8x8xi32>
    %11 = tpu.iota {dimensions = array<i32: 1>} : vector<8x8xi32>
    %12 = arith.cmpi sle, %11, %10 : vector<8x8xi32>
    %cst_5 = arith.constant 0.000000e+00 : f32
    %cst_6 = arith.constant -1.000000e+30 : f32
    %13 = vector.broadcast %cst_5 : f32 to vector<8x8xf32>
    %14 = vector.broadcast %cst_6 : f32 to vector<8x8xf32>
    %15 = arith.select %12, %13, %14 : vector<8x8xi1>, vector<8x8xf32>
    %c0_7 = arith.constant 0 : index
    %c0_8 = arith.constant 0 : index
    %c0_9 = arith.constant 0 : index
    %16 = vector.load %arg4[%c0_7, %c0_8, %c0_9] : memref<2x1x64xf32, #tpu.memory_space<vmem>>, vector<1x1x64xf32>
    %17 = vector.shape_cast %16 : vector<1x1x64xf32> to vector<1x64xf32>
    %c0_10 = arith.constant 0 : index
    %c0_11 = arith.constant 0 : index
    %c0_12 = arith.constant 0 : index
    %18 = vector.load %arg5[%c0_10, %c0_11, %c0_12] : memref<2x1x64xf32, #tpu.memory_space<vmem>>, vector<1x1x64xf32>
    %19 = vector.shape_cast %18 : vector<1x1x64xf32> to vector<1x64xf32>
    %cst_13 = arith.constant dense<0.000000e+00> : vector<8xf32>
    %20 = vector.multi_reduction <add>, %9, %cst_13 [1] : vector<8x64xf32> to vector<8xf32>
    %21 = vector.shape_cast %20 : vector<8xf32> to vector<8x1xf32>
    %cst_14 = arith.constant 6.400000e+01 : f32
    %22 = vector.broadcast %cst_14 : f32 to vector<8x1xf32>
    %23 = arith.divf %21, %22 : vector<8x1xf32>
    %24 = vector.broadcast %23 : vector<8x1xf32> to vector<8x64xf32>
    %25 = arith.subf %9, %24 : vector<8x64xf32>
    %26 = arith.mulf %25, %25 : vector<8x64xf32>
    %cst_15 = arith.constant dense<0.000000e+00> : vector<8xf32>
    %27 = vector.multi_reduction <add>, %26, %cst_15 [1] : vector<8x64xf32> to vector<8xf32>
    %28 = vector.shape_cast %27 : vector<8xf32> to vector<8x1xf32>
    %cst_16 = arith.constant 6.400000e+01 : f32
    %29 = vector.broadcast %cst_16 : f32 to vector<8x1xf32>
    %30 = arith.divf %28, %29 : vector<8x1xf32>
    %31 = vector.broadcast %23 : vector<8x1xf32> to vector<8x64xf32>
    %32 = arith.subf %9, %31 : vector<8x64xf32>
    %cst_17 = arith.constant 9.99999974E-6 : f32
    %33 = vector.broadcast %cst_17 : f32 to vector<8x1xf32>
    %34 = arith.addf %30, %33 : vector<8x1xf32>
    %35 = math.rsqrt %34 : vector<8x1xf32>
    %36 = vector.broadcast %35 : vector<8x1xf32> to vector<8x64xf32>
    %37 = arith.mulf %32, %36 : vector<8x64xf32>
    %38 = vector.broadcast %17 : vector<1x64xf32> to vector<8x64xf32>
    %39 = arith.mulf %37, %38 : vector<8x64xf32>
    %40 = vector.broadcast %19 : vector<1x64xf32> to vector<8x64xf32>
    %41 = arith.addf %39, %40 : vector<8x64xf32>
    %42 = arith.truncf %41 : vector<8x64xf32> to vector<8x64xbf16>
    %43 = vector.shape_cast %42 : vector<8x64xbf16> to vector<1x8x64xbf16>
    %44 = vector.broadcast %43 : vector<1x8x64xbf16> to vector<4x8x64xbf16>
    %c0_18 = arith.constant 0 : index
    %c0_19 = arith.constant 0 : index
    %c0_20 = arith.constant 0 : index
    %c0_21 = arith.constant 0 : index
    %45 = vector.load %arg6[%c0_18, %c0_19, %c0_20, %c0_21] : memref<2x4x64x16xbf16, #tpu.memory_space<vmem>>, vector<1x4x64x16xbf16>
    %46 = vector.shape_cast %45 : vector<1x4x64x16xbf16> to vector<4x64x16xbf16>
    "tpu.trace_start"() <{level = 10 : i32, message = "hte,hed->htd"}> : () -> ()
    %cst_22 = arith.constant dense<0.000000e+00> : vector<4x8x16xf32>
    %47 = tpu.matmul %44, %46, %cst_22 {dimension_numbers = #tpu.dot_dimension_numbers<[2], [1], [1], [2], [0, 0, 0, 1, 1, 2], [0], [0]>} : vector<4x8x64xbf16>, vector<4x64x16xbf16>, vector<4x8x16xf32> -> vector<4x8x16xf32>
    "tpu.trace_stop"() : () -> ()
    %c0_23 = arith.constant 0 : index
    %c0_24 = arith.constant 0 : index
    %c0_25 = arith.constant 0 : index
    %c0_26 = arith.constant 0 : index
    %48 = vector.load %arg7[%c0_23, %c0_24, %c0_25, %c0_26] : memref<2x4x64x16xbf16, #tpu.memory_space<vmem>>, vector<1x4x64x16xbf16>
    %49 = vector.shape_cast %48 : vector<1x4x64x16xbf16> to vector<4x64x16xbf16>
    "tpu.trace_start"() <{level = 10 : i32, message = "hte,hed->htd"}> : () -> ()
    %cst_27 = arith.constant dense<0.000000e+00> : vector<4x8x16xf32>
    %50 = tpu.matmul %44, %49, %cst_27 {dimension_numbers = #tpu.dot_dimension_numbers<[2], [1], [1], [2], [0, 0, 0, 1, 1, 2], [0], [0]>} : vector<4x8x64xbf16>, vector<4x64x16xbf16>, vector<4x8x16xf32> -> vector<4x8x16xf32>
    "tpu.trace_stop"() : () -> ()
    %c0_28 = arith.constant 0 : index
    %c0_29 = arith.constant 0 : index
    %c0_30 = arith.constant 0 : index
    %c0_31 = arith.constant 0 : index
    %51 = vector.load %arg8[%c0_28, %c0_29, %c0_30, %c0_31] : memref<2x4x64x64xbf16, #tpu.memory_space<vmem>>, vector<1x4x64x64xbf16>
    %52 = vector.shape_cast %51 : vector<1x4x64x64xbf16> to vector<4x64x64xbf16>
    "tpu.trace_start"() <{level = 10 : i32, message = "hte,hef->htf"}> : () -> ()
    %cst_32 = arith.constant dense<0.000000e+00> : vector<4x8x64xf32>
    %53 = tpu.matmul %44, %52, %cst_32 {dimension_numbers = #tpu.dot_dimension_numbers<[2], [1], [1], [2], [0, 0, 0, 1, 1, 2], [0], [0]>} : vector<4x8x64xbf16>, vector<4x64x64xbf16>, vector<4x8x64xf32> -> vector<4x8x64xf32>
    "tpu.trace_stop"() : () -> ()
    %54 = arith.truncf %47 : vector<4x8x16xf32> to vector<4x8x16xbf16>
    %55 = arith.truncf %50 : vector<4x8x16xf32> to vector<4x8x16xbf16>
    "tpu.trace_start"() <{level = 10 : i32, message = "hqd,hkd->hqk"}> : () -> ()
    %cst_33 = arith.constant dense<0.000000e+00> : vector<4x8x8xf32>
    %56 = tpu.matmul %54, %55, %cst_33 {dimension_numbers = #tpu.dot_dimension_numbers<[2], [2], [1], [1], [0, 0, 0, 1, 1, 1], [0], [0]>} : vector<4x8x16xbf16>, vector<4x8x16xbf16>, vector<4x8x8xf32> -> vector<4x8x8xf32>
    "tpu.trace_stop"() : () -> ()
    %57 = vector.shape_cast %15 : vector<8x8xf32> to vector<1x8x8xf32>
    %58 = vector.broadcast %57 : vector<1x8x8xf32> to vector<4x8x8xf32>
    %59 = arith.addf %56, %58 : vector<4x8x8xf32>
    %cst_34 = arith.constant dense<0xFF800000> : vector<4x8xf32>
    %60 = vector.multi_reduction <maximumf>, %59, %cst_34 [2] : vector<4x8x8xf32> to vector<4x8xf32>
    %61 = vector.shape_cast %60 : vector<4x8xf32> to vector<4x8x1xf32>
    %62 = vector.broadcast %61 : vector<4x8x1xf32> to vector<4x8x8xf32>
    %63 = arith.subf %59, %62 : vector<4x8x8xf32>
    %64 = math.exp %63 : vector<4x8x8xf32>
    %cst_35 = arith.constant dense<0.000000e+00> : vector<4x8xf32>
    %65 = vector.multi_reduction <add>, %64, %cst_35 [2] : vector<4x8x8xf32> to vector<4x8xf32>
    %66 = vector.shape_cast %65 : vector<4x8xf32> to vector<4x8x1xf32>
    %67 = tpu.reciprocal %66 {approx = true} : vector<4x8x1xf32> -> vector<4x8x1xf32>
    %68 = vector.broadcast %67 : vector<4x8x1xf32> to vector<4x8x8xf32>
    %69 = arith.mulf %64, %68 : vector<4x8x8xf32>
    %70 = arith.truncf %69 : vector<4x8x8xf32> to vector<4x8x8xbf16>
    %71 = arith.truncf %53 : vector<4x8x64xf32> to vector<4x8x64xbf16>
    "tpu.trace_start"() <{level = 10 : i32, message = "hqk,hke->hqe"}> : () -> ()
    %cst_36 = arith.constant dense<0.000000e+00> : vector<4x8x64xf32>
    %72 = tpu.matmul %70, %71, %cst_36 {dimension_numbers = #tpu.dot_dimension_numbers<[2], [1], [1], [2], [0, 0, 0, 1, 1, 2], [0], [0]>} : vector<4x8x8xbf16>, vector<4x8x64xbf16>, vector<4x8x64xf32> -> vector<4x8x64xf32>
    "tpu.trace_stop"() : () -> ()
    %cst_37 = arith.constant dense<0.000000e+00> : vector<8x64xf32>
    %73 = vector.multi_reduction <add>, %72, %cst_37 [0] : vector<4x8x64xf32> to vector<8x64xf32>
    %74 = arith.addf %9, %73 : vector<8x64xf32>
    %c0_38 = arith.constant 0 : index
    %c0_39 = arith.constant 0 : index
    %c0_40 = arith.constant 0 : index
    %75 = vector.load %arg9[%c0_38, %c0_39, %c0_40] : memref<2x1x64xf32, #tpu.memory_space<vmem>>, vector<1x1x64xf32>
    %76 = vector.shape_cast %75 : vector<1x1x64xf32> to vector<1x64xf32>
    %c0_41 = arith.constant 0 : index
    %c0_42 = arith.constant 0 : index
    %c0_43 = arith.constant 0 : index
    %77 = vector.load %arg10[%c0_41, %c0_42, %c0_43] : memref<2x1x64xf32, #tpu.memory_space<vmem>>, vector<1x1x64xf32>
    %78 = vector.shape_cast %77 : vector<1x1x64xf32> to vector<1x64xf32>
    %cst_44 = arith.constant dense<0.000000e+00> : vector<8xf32>
    %79 = vector.multi_reduction <add>, %74, %cst_44 [1] : vector<8x64xf32> to vector<8xf32>
    %80 = vector.shape_cast %79 : vector<8xf32> to vector<8x1xf32>
    %cst_45 = arith.constant 6.400000e+01 : f32
    %81 = vector.broadcast %cst_45 : f32 to vector<8x1xf32>
    %82 = arith.divf %80, %81 : vector<8x1xf32>
    %83 = vector.broadcast %82 : vector<8x1xf32> to vector<8x64xf32>
    %84 = arith.subf %74, %83 : vector<8x64xf32>
    %85 = arith.mulf %84, %84 : vector<8x64xf32>
    %cst_46 = arith.constant dense<0.000000e+00> : vector<8xf32>
    %86 = vector.multi_reduction <add>, %85, %cst_46 [1] : vector<8x64xf32> to vector<8xf32>
    %87 = vector.shape_cast %86 : vector<8xf32> to vector<8x1xf32>
    %cst_47 = arith.constant 6.400000e+01 : f32
    %88 = vector.broadcast %cst_47 : f32 to vector<8x1xf32>
    %89 = arith.divf %87, %88 : vector<8x1xf32>
    %90 = vector.broadcast %82 : vector<8x1xf32> to vector<8x64xf32>
    %91 = arith.subf %74, %90 : vector<8x64xf32>
    %cst_48 = arith.constant 9.99999974E-6 : f32
    %92 = vector.broadcast %cst_48 : f32 to vector<8x1xf32>
    %93 = arith.addf %89, %92 : vector<8x1xf32>
    %94 = math.rsqrt %93 : vector<8x1xf32>
    %95 = vector.broadcast %94 : vector<8x1xf32> to vector<8x64xf32>
    %96 = arith.mulf %91, %95 : vector<8x64xf32>
    %97 = vector.broadcast %76 : vector<1x64xf32> to vector<8x64xf32>
    %98 = arith.mulf %96, %97 : vector<8x64xf32>
    %99 = vector.broadcast %78 : vector<1x64xf32> to vector<8x64xf32>
    %100 = arith.addf %98, %99 : vector<8x64xf32>
    %101 = arith.truncf %100 : vector<8x64xf32> to vector<8x64xbf16>
    %c0_49 = arith.constant 0 : index
    %c0_50 = arith.constant 0 : index
    %c0_51 = arith.constant 0 : index
    %102 = vector.load %arg11[%c0_49, %c0_50, %c0_51] : memref<2x64x256xbf16, #tpu.memory_space<vmem>>, vector<1x64x256xbf16>
    %103 = vector.shape_cast %102 : vector<1x64x256xbf16> to vector<64x256xbf16>
    %cst_52 = arith.constant dense<0.000000e+00> : vector<8x256xf32>
    %104 = tpu.matmul %101, %103, %cst_52 {dimension_numbers = #tpu.dot_dimension_numbers<[1], [0], [0], [1], [0, 0, 1, 1], [], []>} : vector<8x64xbf16>, vector<64x256xbf16>, vector<8x256xf32> -> vector<8x256xf32>
    %c0_53 = arith.constant 0 : index
    %c0_54 = arith.constant 0 : index
    %c0_55 = arith.constant 0 : index
    %105 = vector.load %arg12[%c0_53, %c0_54, %c0_55] : memref<2x1x256xf32, #tpu.memory_space<vmem>>, vector<1x1x256xf32>
    %106 = vector.shape_cast %105 : vector<1x1x256xf32> to vector<1x256xf32>
    %107 = vector.broadcast %106 : vector<1x256xf32> to vector<8x256xf32>
    %108 = arith.addf %104, %107 : vector<8x256xf32>
    %cst_56 = arith.constant 0.000000e+00 : f32
    %109 = vector.broadcast %cst_56 : f32 to vector<8x256xf32>
    %110 = arith.maximumf %108, %109 : vector<8x256xf32>
    %111 = arith.truncf %110 : vector<8x256xf32> to vector<8x256xbf16>
    %c0_57 = arith.constant 0 : index
    %c0_58 = arith.constant 0 : index
    %c0_59 = arith.constant 0 : index
    %112 = vector.load %arg13[%c0_57, %c0_58, %c0_59] : memref<2x256x64xbf16, #tpu.memory_space<vmem>>, vector<1x256x64xbf16>
    %113 = vector.shape_cast %112 : vector<1x256x64xbf16> to vector<256x64xbf16>
    %cst_60 = arith.constant dense<0.000000e+00> : vector<8x64xf32>
    %114 = tpu.matmul %111, %113, %cst_60 {dimension_numbers = #tpu.dot_dimension_numbers<[1], [0], [0], [1], [0, 0, 1, 1], [], []>} : vector<8x256xbf16>, vector<256x64xbf16>, vector<8x64xf32> -> vector<8x64xf32>
    %c0_61 = arith.constant 0 : index
    %c0_62 = arith.constant 0 : index
    %c0_63 = arith.constant 0 : index
    %115 = vector.load %arg14[%c0_61, %c0_62, %c0_63] : memref<2x1x64xf32, #tpu.memory_space<vmem>>, vector<1x1x64xf32>
    %116 = vector.shape_cast %115 : vector<1x1x64xf32> to vector<1x64xf32>
    %117 = vector.broadcast %116 : vector<1x64xf32> to vector<8x64xf32>
    %118 = arith.addf %114, %117 : vector<8x64xf32>
    %119 = arith.addf %74, %118 : vector<8x64xf32>
    %c1 = arith.constant 1 : index
    %c0_64 = arith.constant 0 : index
    %c0_65 = arith.constant 0 : index
    %120 = vector.load %arg4[%c1, %c0_64, %c0_65] : memref<2x1x64xf32, #tpu.memory_space<vmem>>, vector<1x1x64xf32>
    %121 = vector.shape_cast %120 : vector<1x1x64xf32> to vector<1x64xf32>
    %c1_66 = arith.constant 1 : index
    %c0_67 = arith.constant 0 : index
    %c0_68 = arith.constant 0 : index
    %122 = vector.load %arg5[%c1_66, %c0_67, %c0_68] : memref<2x1x64xf32, #tpu.memory_space<vmem>>, vector<1x1x64xf32>
    %123 = vector.shape_cast %122 : vector<1x1x64xf32> to vector<1x64xf32>
    %cst_69 = arith.constant dense<0.000000e+00> : vector<8xf32>
    %124 = vector.multi_reduction <add>, %119, %cst_69 [1] : vector<8x64xf32> to vector<8xf32>
    %125 = vector.shape_cast %124 : vector<8xf32> to vector<8x1xf32>
    %cst_70 = arith.constant 6.400000e+01 : f32
    %126 = vector.broadcast %cst_70 : f32 to vector<8x1xf32>
    %127 = arith.divf %125, %126 : vector<8x1xf32>
    %128 = vector.broadcast %127 : vector<8x1xf32> to vector<8x64xf32>
    %129 = arith.subf %119, %128 : vector<8x64xf32>
    %130 = arith.mulf %129, %129 : vector<8x64xf32>
    %cst_71 = arith.constant dense<0.000000e+00> : vector<8xf32>
    %131 = vector.multi_reduction <add>, %130, %cst_71 [1] : vector<8x64xf32> to vector<8xf32>
    %132 = vector.shape_cast %131 : vector<8xf32> to vector<8x1xf32>
    %cst_72 = arith.constant 6.400000e+01 : f32
    %133 = vector.broadcast %cst_72 : f32 to vector<8x1xf32>
    %134 = arith.divf %132, %133 : vector<8x1xf32>
    %135 = vector.broadcast %127 : vector<8x1xf32> to vector<8x64xf32>
    %136 = arith.subf %119, %135 : vector<8x64xf32>
    %cst_73 = arith.constant 9.99999974E-6 : f32
    %137 = vector.broadcast %cst_73 : f32 to vector<8x1xf32>
    %138 = arith.addf %134, %137 : vector<8x1xf32>
    %139 = math.rsqrt %138 : vector<8x1xf32>
    %140 = vector.broadcast %139 : vector<8x1xf32> to vector<8x64xf32>
    %141 = arith.mulf %136, %140 : vector<8x64xf32>
    %142 = vector.broadcast %121 : vector<1x64xf32> to vector<8x64xf32>
    %143 = arith.mulf %141, %142 : vector<8x64xf32>
    %144 = vector.broadcast %123 : vector<1x64xf32> to vector<8x64xf32>
    %145 = arith.addf %143, %144 : vector<8x64xf32>
    %146 = arith.truncf %145 : vector<8x64xf32> to vector<8x64xbf16>
    %147 = vector.shape_cast %146 : vector<8x64xbf16> to vector<1x8x64xbf16>
    %148 = vector.broadcast %147 : vector<1x8x64xbf16> to vector<4x8x64xbf16>
    %c1_74 = arith.constant 1 : index
    %c0_75 = arith.constant 0 : index
    %c0_76 = arith.constant 0 : index
    %c0_77 = arith.constant 0 : index
    %149 = vector.load %arg6[%c1_74, %c0_75, %c0_76, %c0_77] : memref<2x4x64x16xbf16, #tpu.memory_space<vmem>>, vector<1x4x64x16xbf16>
    %150 = vector.shape_cast %149 : vector<1x4x64x16xbf16> to vector<4x64x16xbf16>
    "tpu.trace_start"() <{level = 10 : i32, message = "hte,hed->htd"}> : () -> ()
    %cst_78 = arith.constant dense<0.000000e+00> : vector<4x8x16xf32>
    %151 = tpu.matmul %148, %150, %cst_78 {dimension_numbers = #tpu.dot_dimension_numbers<[2], [1], [1], [2], [0, 0, 0, 1, 1, 2], [0], [0]>} : vector<4x8x64xbf16>, vector<4x64x16xbf16>, vector<4x8x16xf32> -> vector<4x8x16xf32>
    "tpu.trace_stop"() : () -> ()
    %c1_79 = arith.constant 1 : index
    %c0_80 = arith.constant 0 : index
    %c0_81 = arith.constant 0 : index
    %c0_82 = arith.constant 0 : index
    %152 = vector.load %arg7[%c1_79, %c0_80, %c0_81, %c0_82] : memref<2x4x64x16xbf16, #tpu.memory_space<vmem>>, vector<1x4x64x16xbf16>
    %153 = vector.shape_cast %152 : vector<1x4x64x16xbf16> to vector<4x64x16xbf16>
    "tpu.trace_start"() <{level = 10 : i32, message = "hte,hed->htd"}> : () -> ()
    %cst_83 = arith.constant dense<0.000000e+00> : vector<4x8x16xf32>
    %154 = tpu.matmul %148, %153, %cst_83 {dimension_numbers = #tpu.dot_dimension_numbers<[2], [1], [1], [2], [0, 0, 0, 1, 1, 2], [0], [0]>} : vector<4x8x64xbf16>, vector<4x64x16xbf16>, vector<4x8x16xf32> -> vector<4x8x16xf32>
    "tpu.trace_stop"() : () -> ()
    %c1_84 = arith.constant 1 : index
    %c0_85 = arith.constant 0 : index
    %c0_86 = arith.constant 0 : index
    %c0_87 = arith.constant 0 : index
    %155 = vector.load %arg8[%c1_84, %c0_85, %c0_86, %c0_87] : memref<2x4x64x64xbf16, #tpu.memory_space<vmem>>, vector<1x4x64x64xbf16>
    %156 = vector.shape_cast %155 : vector<1x4x64x64xbf16> to vector<4x64x64xbf16>
    "tpu.trace_start"() <{level = 10 : i32, message = "hte,hef->htf"}> : () -> ()
    %cst_88 = arith.constant dense<0.000000e+00> : vector<4x8x64xf32>
    %157 = tpu.matmul %148, %156, %cst_88 {dimension_numbers = #tpu.dot_dimension_numbers<[2], [1], [1], [2], [0, 0, 0, 1, 1, 2], [0], [0]>} : vector<4x8x64xbf16>, vector<4x64x64xbf16>, vector<4x8x64xf32> -> vector<4x8x64xf32>
    "tpu.trace_stop"() : () -> ()
    %158 = arith.truncf %151 : vector<4x8x16xf32> to vector<4x8x16xbf16>
    %159 = arith.truncf %154 : vector<4x8x16xf32> to vector<4x8x16xbf16>
    "tpu.trace_start"() <{level = 10 : i32, message = "hqd,hkd->hqk"}> : () -> ()
    %cst_89 = arith.constant dense<0.000000e+00> : vector<4x8x8xf32>
    %160 = tpu.matmul %158, %159, %cst_89 {dimension_numbers = #tpu.dot_dimension_numbers<[2], [2], [1], [1], [0, 0, 0, 1, 1, 1], [0], [0]>} : vector<4x8x16xbf16>, vector<4x8x16xbf16>, vector<4x8x8xf32> -> vector<4x8x8xf32>
    "tpu.trace_stop"() : () -> ()
    %161 = vector.shape_cast %15 : vector<8x8xf32> to vector<1x8x8xf32>
    %162 = vector.broadcast %161 : vector<1x8x8xf32> to vector<4x8x8xf32>
    %163 = arith.addf %160, %162 : vector<4x8x8xf32>
    %cst_90 = arith.constant dense<0xFF800000> : vector<4x8xf32>
    %164 = vector.multi_reduction <maximumf>, %163, %cst_90 [2] : vector<4x8x8xf32> to vector<4x8xf32>
    %165 = vector.shape_cast %164 : vector<4x8xf32> to vector<4x8x1xf32>
    %166 = vector.broadcast %165 : vector<4x8x1xf32> to vector<4x8x8xf32>
    %167 = arith.subf %163, %166 : vector<4x8x8xf32>
    %168 = math.exp %167 : vector<4x8x8xf32>
    %cst_91 = arith.constant dense<0.000000e+00> : vector<4x8xf32>
    %169 = vector.multi_reduction <add>, %168, %cst_91 [2] : vector<4x8x8xf32> to vector<4x8xf32>
    %170 = vector.shape_cast %169 : vector<4x8xf32> to vector<4x8x1xf32>
    %171 = tpu.reciprocal %170 {approx = true} : vector<4x8x1xf32> -> vector<4x8x1xf32>
    %172 = vector.broadcast %171 : vector<4x8x1xf32> to vector<4x8x8xf32>
    %173 = arith.mulf %168, %172 : vector<4x8x8xf32>
    %174 = arith.truncf %173 : vector<4x8x8xf32> to vector<4x8x8xbf16>
    %175 = arith.truncf %157 : vector<4x8x64xf32> to vector<4x8x64xbf16>
    "tpu.trace_start"() <{level = 10 : i32, message = "hqk,hke->hqe"}> : () -> ()
    %cst_92 = arith.constant dense<0.000000e+00> : vector<4x8x64xf32>
    %176 = tpu.matmul %174, %175, %cst_92 {dimension_numbers = #tpu.dot_dimension_numbers<[2], [1], [1], [2], [0, 0, 0, 1, 1, 2], [0], [0]>} : vector<4x8x8xbf16>, vector<4x8x64xbf16>, vector<4x8x64xf32> -> vector<4x8x64xf32>
    "tpu.trace_stop"() : () -> ()
    %cst_93 = arith.constant dense<0.000000e+00> : vector<8x64xf32>
    %177 = vector.multi_reduction <add>, %176, %cst_93 [0] : vector<4x8x64xf32> to vector<8x64xf32>
    %178 = arith.addf %119, %177 : vector<8x64xf32>
    %c1_94 = arith.constant 1 : index
    %c0_95 = arith.constant 0 : index
    %c0_96 = arith.constant 0 : index
    %179 = vector.load %arg9[%c1_94, %c0_95, %c0_96] : memref<2x1x64xf32, #tpu.memory_space<vmem>>, vector<1x1x64xf32>
    %180 = vector.shape_cast %179 : vector<1x1x64xf32> to vector<1x64xf32>
    %c1_97 = arith.constant 1 : index
    %c0_98 = arith.constant 0 : index
    %c0_99 = arith.constant 0 : index
    %181 = vector.load %arg10[%c1_97, %c0_98, %c0_99] : memref<2x1x64xf32, #tpu.memory_space<vmem>>, vector<1x1x64xf32>
    %182 = vector.shape_cast %181 : vector<1x1x64xf32> to vector<1x64xf32>
    %cst_100 = arith.constant dense<0.000000e+00> : vector<8xf32>
    %183 = vector.multi_reduction <add>, %178, %cst_100 [1] : vector<8x64xf32> to vector<8xf32>
    %184 = vector.shape_cast %183 : vector<8xf32> to vector<8x1xf32>
    %cst_101 = arith.constant 6.400000e+01 : f32
    %185 = vector.broadcast %cst_101 : f32 to vector<8x1xf32>
    %186 = arith.divf %184, %185 : vector<8x1xf32>
    %187 = vector.broadcast %186 : vector<8x1xf32> to vector<8x64xf32>
    %188 = arith.subf %178, %187 : vector<8x64xf32>
    %189 = arith.mulf %188, %188 : vector<8x64xf32>
    %cst_102 = arith.constant dense<0.000000e+00> : vector<8xf32>
    %190 = vector.multi_reduction <add>, %189, %cst_102 [1] : vector<8x64xf32> to vector<8xf32>
    %191 = vector.shape_cast %190 : vector<8xf32> to vector<8x1xf32>
    %cst_103 = arith.constant 6.400000e+01 : f32
    %192 = vector.broadcast %cst_103 : f32 to vector<8x1xf32>
    %193 = arith.divf %191, %192 : vector<8x1xf32>
    %194 = vector.broadcast %186 : vector<8x1xf32> to vector<8x64xf32>
    %195 = arith.subf %178, %194 : vector<8x64xf32>
    %cst_104 = arith.constant 9.99999974E-6 : f32
    %196 = vector.broadcast %cst_104 : f32 to vector<8x1xf32>
    %197 = arith.addf %193, %196 : vector<8x1xf32>
    %198 = math.rsqrt %197 : vector<8x1xf32>
    %199 = vector.broadcast %198 : vector<8x1xf32> to vector<8x64xf32>
    %200 = arith.mulf %195, %199 : vector<8x64xf32>
    %201 = vector.broadcast %180 : vector<1x64xf32> to vector<8x64xf32>
    %202 = arith.mulf %200, %201 : vector<8x64xf32>
    %203 = vector.broadcast %182 : vector<1x64xf32> to vector<8x64xf32>
    %204 = arith.addf %202, %203 : vector<8x64xf32>
    %205 = arith.truncf %204 : vector<8x64xf32> to vector<8x64xbf16>
    %c1_105 = arith.constant 1 : index
    %c0_106 = arith.constant 0 : index
    %c0_107 = arith.constant 0 : index
    %206 = vector.load %arg11[%c1_105, %c0_106, %c0_107] : memref<2x64x256xbf16, #tpu.memory_space<vmem>>, vector<1x64x256xbf16>
    %207 = vector.shape_cast %206 : vector<1x64x256xbf16> to vector<64x256xbf16>
    %cst_108 = arith.constant dense<0.000000e+00> : vector<8x256xf32>
    %208 = tpu.matmul %205, %207, %cst_108 {dimension_numbers = #tpu.dot_dimension_numbers<[1], [0], [0], [1], [0, 0, 1, 1], [], []>} : vector<8x64xbf16>, vector<64x256xbf16>, vector<8x256xf32> -> vector<8x256xf32>
    %c1_109 = arith.constant 1 : index
    %c0_110 = arith.constant 0 : index
    %c0_111 = arith.constant 0 : index
    %209 = vector.load %arg12[%c1_109, %c0_110, %c0_111] : memref<2x1x256xf32, #tpu.memory_space<vmem>>, vector<1x1x256xf32>
    %210 = vector.shape_cast %209 : vector<1x1x256xf32> to vector<1x256xf32>
    %211 = vector.broadcast %210 : vector<1x256xf32> to vector<8x256xf32>
    %212 = arith.addf %208, %211 : vector<8x256xf32>
    %cst_112 = arith.constant 0.000000e+00 : f32
    %213 = vector.broadcast %cst_112 : f32 to vector<8x256xf32>
    %214 = arith.maximumf %212, %213 : vector<8x256xf32>
    %215 = arith.truncf %214 : vector<8x256xf32> to vector<8x256xbf16>
    %c1_113 = arith.constant 1 : index
    %c0_114 = arith.constant 0 : index
    %c0_115 = arith.constant 0 : index
    %216 = vector.load %arg13[%c1_113, %c0_114, %c0_115] : memref<2x256x64xbf16, #tpu.memory_space<vmem>>, vector<1x256x64xbf16>
    %217 = vector.shape_cast %216 : vector<1x256x64xbf16> to vector<256x64xbf16>
    %cst_116 = arith.constant dense<0.000000e+00> : vector<8x64xf32>
    %218 = tpu.matmul %215, %217, %cst_116 {dimension_numbers = #tpu.dot_dimension_numbers<[1], [0], [0], [1], [0, 0, 1, 1], [], []>} : vector<8x256xbf16>, vector<256x64xbf16>, vector<8x64xf32> -> vector<8x64xf32>
    %c1_117 = arith.constant 1 : index
    %c0_118 = arith.constant 0 : index
    %c0_119 = arith.constant 0 : index
    %219 = vector.load %arg14[%c1_117, %c0_118, %c0_119] : memref<2x1x64xf32, #tpu.memory_space<vmem>>, vector<1x1x64xf32>
    %220 = vector.shape_cast %219 : vector<1x1x64xf32> to vector<1x64xf32>
    %221 = vector.broadcast %220 : vector<1x64xf32> to vector<8x64xf32>
    %222 = arith.addf %218, %221 : vector<8x64xf32>
    %223 = arith.addf %178, %222 : vector<8x64xf32>
    %c0_120 = arith.constant 0 : index
    %c0_121 = arith.constant 0 : index
    %224 = vector.load %arg15[%c0_120, %c0_121] : memref<1x64xf32, #tpu.memory_space<vmem>>, vector<1x64xf32>
    %c0_122 = arith.constant 0 : index
    %c0_123 = arith.constant 0 : index
    %225 = vector.load %arg16[%c0_122, %c0_123] : memref<1x64xf32, #tpu.memory_space<vmem>>, vector<1x64xf32>
    %cst_124 = arith.constant dense<0.000000e+00> : vector<8xf32>
    %226 = vector.multi_reduction <add>, %223, %cst_124 [1] : vector<8x64xf32> to vector<8xf32>
    %227 = vector.shape_cast %226 : vector<8xf32> to vector<8x1xf32>
    %cst_125 = arith.constant 6.400000e+01 : f32
    %228 = vector.broadcast %cst_125 : f32 to vector<8x1xf32>
    %229 = arith.divf %227, %228 : vector<8x1xf32>
    %230 = vector.broadcast %229 : vector<8x1xf32> to vector<8x64xf32>
    %231 = arith.subf %223, %230 : vector<8x64xf32>
    %232 = arith.mulf %231, %231 : vector<8x64xf32>
    %cst_126 = arith.constant dense<0.000000e+00> : vector<8xf32>
    %233 = vector.multi_reduction <add>, %232, %cst_126 [1] : vector<8x64xf32> to vector<8xf32>
    %234 = vector.shape_cast %233 : vector<8xf32> to vector<8x1xf32>
    %cst_127 = arith.constant 6.400000e+01 : f32
    %235 = vector.broadcast %cst_127 : f32 to vector<8x1xf32>
    %236 = arith.divf %234, %235 : vector<8x1xf32>
    %237 = vector.broadcast %229 : vector<8x1xf32> to vector<8x64xf32>
    %238 = arith.subf %223, %237 : vector<8x64xf32>
    %cst_128 = arith.constant 9.99999974E-6 : f32
    %239 = vector.broadcast %cst_128 : f32 to vector<8x1xf32>
    %240 = arith.addf %236, %239 : vector<8x1xf32>
    %241 = math.rsqrt %240 : vector<8x1xf32>
    %242 = vector.broadcast %241 : vector<8x1xf32> to vector<8x64xf32>
    %243 = arith.mulf %238, %242 : vector<8x64xf32>
    %244 = vector.broadcast %224 : vector<1x64xf32> to vector<8x64xf32>
    %245 = arith.mulf %243, %244 : vector<8x64xf32>
    %246 = vector.broadcast %225 : vector<1x64xf32> to vector<8x64xf32>
    %247 = arith.addf %245, %246 : vector<8x64xf32>
    %248 = arith.truncf %247 : vector<8x64xf32> to vector<8x64xbf16>
    %c0_129 = arith.constant 0 : index
    %c0_130 = arith.constant 0 : index
    %249 = vector.load %arg17[%c0_129, %c0_130] : memref<64x128xbf16, #tpu.memory_space<vmem>>, vector<64x128xbf16>
    %cst_131 = arith.constant dense<0.000000e+00> : vector<8x128xf32>
    %250 = tpu.matmul %248, %249, %cst_131 {dimension_numbers = #tpu.dot_dimension_numbers<[1], [0], [0], [1], [0, 0, 1, 1], [], []>} : vector<8x64xbf16>, vector<64x128xbf16>, vector<8x128xf32> -> vector<8x128xf32>
    %c0_132 = arith.constant 0 : index
    %c0_133 = arith.constant 0 : index
    %251 = vector.load %arg18[%c0_132, %c0_133] : memref<1x128xf32, #tpu.memory_space<vmem>>, vector<1x128xf32>
    %252 = vector.broadcast %251 : vector<1x128xf32> to vector<8x128xf32>
    %253 = arith.addf %250, %252 : vector<8x128xf32>
    %c0_134 = arith.constant 0 : index
    %c0_135 = arith.constant 0 : index
    %254 = vector.load %arg19[%c0_134, %c0_135] : memref<8x128xf32, #tpu.memory_space<vmem>>, vector<8x128xf32>
    tpu.vector_store %arg19[%c0_134, %c0_135], %253 {strides = array<i32>} : memref<8x128xf32, #tpu.memory_space<vmem>>, vector<8x128xf32>,
    return
  }
  func.func @transform_0(%arg0: i32) -> (i32, i32) {
    %c0_i32 = arith.constant 0 : i32
    %c0_i32_0 = arith.constant 0 : i32
    return %arg0, %c0_i32 : i32, i32
  }
  func.func @transform_1(%arg0: i32) -> (i32, i32) {
    %c0_i32 = arith.constant 0 : i32
    %c0_i32_0 = arith.constant 0 : i32
    %c0_i32_1 = arith.constant 0 : i32
    return %c0_i32, %c0_i32_0 : i32, i32
  }
  func.func @transform_2(%arg0: i32) -> (i32, i32) {
    %c0_i32 = arith.constant 0 : i32
    %c0_i32_0 = arith.constant 0 : i32
    %c0_i32_1 = arith.constant 0 : i32
    return %c0_i32, %c0_i32_0 : i32, i32
  }
  func.func @transform_3(%arg0: i32) -> (i32, i32, i32) {
    %c0_i32 = arith.constant 0 : i32
    %c0_i32_0 = arith.constant 0 : i32
    %c0_i32_1 = arith.constant 0 : i32
    %c0_i32_2 = arith.constant 0 : i32
    return %c0_i32, %c0_i32_0, %c0_i32_1 : i32, i32, i32
  }
  func.func @transform_4(%arg0: i32) -> (i32, i32, i32) {
    %c0_i32 = arith.constant 0 : i32
    %c0_i32_0 = arith.constant 0 : i32
    %c0_i32_1 = arith.constant 0 : i32
    %c0_i32_2 = arith.constant 0 : i32
    return %c0_i32, %c0_i32_0, %c0_i32_1 : i32, i32, i32
  }
  func.func @transform_5(%arg0: i32) -> (i32, i32, i32, i32) {
    %c0_i32 = arith.constant 0 : i32
    %c0_i32_0 = arith.constant 0 : i32
    %c0_i32_1 = arith.constant 0 : i32
    %c0_i32_2 = arith.constant 0 : i32
    %c0_i32_3 = arith.constant 0 : i32
    return %c0_i32, %c0_i32_0, %c0_i32_1, %c0_i32_2 : i32, i32, i32, i32
  }
  func.func @transform_6(%arg0: i32) -> (i32, i32, i32, i32) {
    %c0_i32 = arith.constant 0 : i32
    %c0_i32_0 = arith.constant 0 : i32
    %c0_i32_1 = arith.constant 0 : i32
    %c0_i32_2 = arith.constant 0 : i32
    %c0_i32_3 = arith.constant 0 : i32
    return %c0_i32, %c0_i32_0, %c0_i32_1, %c0_i32_2 : i32, i32, i32, i32
  }
  func.func @transform_7(%arg0: i32) -> (i32, i32, i32, i32) {
    %c0_i32 = arith.constant 0 : i32
    %c0_i32_0 = arith.constant 0 : i32
    %c0_i32_1 = arith.constant 0 : i32
    %c0_i32_2 = arith.constant 0 : i32
    %c0_i32_3 = arith.constant 0 : i32
    return %c0_i32, %c0_i32_0, %c0_i32_1, %c0_i32_2 : i32, i32, i32, i32
  }
  func.func @transform_8(%arg0: i32) -> (i32, i32, i32) {
    %c0_i32 = arith.constant 0 : i32
    %c0_i32_0 = arith.constant 0 : i32
    %c0_i32_1 = arith.constant 0 : i32
    %c0_i32_2 = arith.constant 0 : i32
    return %c0_i32, %c0_i32_0, %c0_i32_1 : i32, i32, i32
  }
  func.func @transform_9(%arg0: i32) -> (i32, i32, i32) {
    %c0_i32 = arith.constant 0 : i32
    %c0_i32_0 = arith.constant 0 : i32
    %c0_i32_1 = arith.constant 0 : i32
    %c0_i32_2 = arith.constant 0 : i32
    return %c0_i32, %c0_i32_0, %c0_i32_1 : i32, i32, i32
  }
  func.func @transform_10(%arg0: i32) -> (i32, i32, i32) {
    %c0_i32 = arith.constant 0 : i32
    %c0_i32_0 = arith.constant 0 : i32
    %c0_i32_1 = arith.constant 0 : i32
    %c0_i32_2 = arith.constant 0 : i32
    return %c0_i32, %c0_i32_0, %c0_i32_1 : i32, i32, i32
  }
  func.func @transform_11(%arg0: i32) -> (i32, i32, i32) {
    %c0_i32 = arith.constant 0 : i32
    %c0_i32_0 = arith.constant 0 : i32
    %c0_i32_1 = arith.constant 0 : i32
    %c0_i32_2 = arith.constant 0 : i32
    return %c0_i32, %c0_i32_0, %c0_i32_1 : i32, i32, i32
  }
  func.func @transform_12(%arg0: i32) -> (i32, i32, i32) {
    %c0_i32 = arith.constant 0 : i32
    %c0_i32_0 = arith.constant 0 : i32
    %c0_i32_1 = arith.constant 0 : i32
    %c0_i32_2 = arith.constant 0 : i32
    return %c0_i32, %c0_i32_0, %c0_i32_1 : i32, i32, i32
  }
  func.func @transform_13(%arg0: i32) -> (i32, i32, i32) {
    %c0_i32 = arith.constant 0 : i32
    %c0_i32_0 = arith.constant 0 : i32
    %c0_i32_1 = arith.constant 0 : i32
    %c0_i32_2 = arith.constant 0 : i32
    return %c0_i32, %c0_i32_0, %c0_i32_1 : i32, i32, i32
  }
  func.func @transform_14(%arg0: i32) -> (i32, i32) {
    %c0_i32 = arith.constant 0 : i32
    %c0_i32_0 = arith.constant 0 : i32
    %c0_i32_1 = arith.constant 0 : i32
    return %c0_i32, %c0_i32_0 : i32, i32
  }
  func.func @transform_15(%arg0: i32) -> (i32, i32) {
    %c0_i32 = arith.constant 0 : i32
    %c0_i32_0 = arith.constant 0 : i32
    %c0_i32_1 = arith.constant 0 : i32
    return %c0_i32, %c0_i32_0 : i32, i32
  }
  func.func @transform_16(%arg0: i32) -> (i32, i32) {
    %c0_i32 = arith.constant 0 : i32
    %c0_i32_0 = arith.constant 0 : i32
    %c0_i32_1 = arith.constant 0 : i32
    return %c0_i32, %c0_i32_0 : i32, i32
  }
  func.func @transform_17(%arg0: i32) -> (i32, i32) {
    %c0_i32 = arith.constant 0 : i32
    %c0_i32_0 = arith.constant 0 : i32
    %c0_i32_1 = arith.constant 0 : i32
    return %c0_i32, %c0_i32_0 : i32, i32
  }
  func.func @transform_18(%arg0: i32) -> (i32, i32) {
    %c0_i32 = arith.constant 0 : i32
    %c0_i32_0 = arith.constant 0 : i32
    return %arg0, %c0_i32 : i32, i32
  }
}

</mosaic_0001>

<bundles_post_ra>
// kernel: tpu_custom_call.1
= control target key start
LH: loop header
LB: loop body
LE: loop exit
PB: predicated region body
PF: predicated region fallthrough
CT: control target
= control target key end

     0   :  { %s4994_s0 = inlined_call_operand.vmem [shape: s32[16,1], index: 0, kind: input, shape index: {}]   ;;  %s4995_s1 = inlined_call_operand.vmem [shape: f32[128,64], index: 1, kind: input, shape index: {}]   ;;  %s4996_s2 = inlined_call_operand.vmem [shape: f32[16,64], index: 2, kind: input, shape index: {}]   ;;  %s4997_s3 = inlined_call_operand.vmem [shape: f32[2,1,64], index: 3, kind: input, shape index: {}]   ;;  %s4998_s4 = inlined_call_operand.vmem [shape: f32[2,1,64], index: 4, kind: input, shape index: {}]   ;;  %s4999_s5 = inlined_call_operand.vmem [shape: bf16[2,4,64,16], index: 5, kind: input, shape index: {}]   ;;  %s5000_s6 = inlined_call_operand.vmem [shape: bf16[2,4,64,16], index: 6, kind: input, shape index: {}]   ;;  %s5001_s7 = inlined_call_operand.vmem [shape: bf16[2,4,64,64], index: 7, kind: input, shape index: {}]   ;;  %s5002_s8 = inlined_call_operand.vmem [shape: f32[2,1,64], index: 8, kind: input, shape index: {}]   ;;  %s5003_s9 = inlined_call_operand.vmem [shape: f32[2,1,64], index: 9, kind: input, shape index: {}]   ;;  %s5004_s10 = inlined_call_operand.vmem [shape: bf16[2,64,256], index: 10, kind: input, shape index: {}]   ;;  %s5005_s11 = inlined_call_operand.vmem [shape: f32[2,1,256], index: 11, kind: input, shape index: {}]   ;;  %s5006_s12 = inlined_call_operand.vmem [shape: bf16[2,256,64], index: 12, kind: input, shape index: {}]   ;;  %s5007_s13 = inlined_call_operand.vmem [shape: f32[2,1,64], index: 13, kind: input, shape index: {}]   ;;  %s5008_s14 = inlined_call_operand.vmem [shape: f32[1,64], index: 14, kind: input, shape index: {}]   ;;  %s5009_s15 = inlined_call_operand.vmem [shape: f32[1,64], index: 15, kind: input, shape index: {}]   ;;  %s5010_s16 = inlined_call_operand.vmem [shape: bf16[64,128], index: 16, kind: input, shape index: {}]   ;;  %s5011_s17 = inlined_call_operand.vmem [shape: f32[1,128], index: 17, kind: input, shape index: {}]   ;;  %s5012_s18 = inlined_call_operand.hbm [shape: f32[16,128], index: 18, kind: output, shape index: {}]  }
   0x1   :  { %5023 = sst [smem:[#allocation12_spill]] %s4994_s0 }
   0x2   :  { %5024 = sst [smem:[#allocation13_spill]] %s4995_s1 }
   0x3   :  { %5025 = sst [smem:[#allocation14_spill]] %s4996_s2 }
   0x4   :  { %5026 = sst [smem:[#allocation15_spill]] %s4997_s3 }
   0x5   :  { %5027 = sst [smem:[#allocation16_spill]] %s4998_s4 }
   0x6   :  { %5028 = sst [smem:[#allocation17_spill]] %s5011_s17 }
   0x7   :  { %5029 = sst [smem:[#allocation18_spill]] %s5012_s18 }
   0x8   :  { %23 = vsyncpa [#allocation3], 0 }
   0x9   :  { %25 = vsyncpa [#allocation3 + $0x1], 0  ;;  %s4158_s27 = smov 0   ;;  %s4160_s28 = smov 0  }
   0xa   :  { %s4162_s29 = smov 0   ;;  %s4164_s30 = smov 0  }
   0xb LB: > { %5030 = sst [smem:[#allocation5_spill]] %s4045_s27  ;;  %s4179_s0 = sadd.s32 4294967295, %s4057_s30   ;;  %s4057_s30 = sphi %s4164_s30, %s5050_s30   ;;  %s4053_s29 = sphi %s4162_s29, %s5052_s29   ;;  %s4049_s28 = sphi %s4160_s28, %s5054_s28   ;;  %s4045_s27 = sphi %s4158_s27, %s5053_s27  }
   0xc   : > { %5031 = sst [smem:[#allocation6_spill]] %s4053_s29  ;;  %s2955_s19 = sadd.s32 4294967294, %s4057_s30  }
   0xd   : > { %5032 = sst [smem:[#allocation7_spill]] %s4057_s30  ;;  %s4183_s1 = sadd.s32 1, %s4057_s30  }
   0xe   : > { %5033 = sst [smem:[#allocation8_spill]] %s4183_s1  ;;  %s421_s20 = sadd.s32 1, %s4053_s29 }
   0xf   : > { %s418_s21 = ssub.s32 %s4057_s30, %s4183_s1  ;;  %p431_p0 = scmp.ne.s32.totalorder %s4053_s29, %s4049_s28 }
  0x10   : > { %p419_p1 = scmp.eq.s32.totalorder %s418_s21, 0  ;;  %p432_p2 = scmp.eq.s32.totalorder %s4179_s0, 1 }
  0x11   : > { %p437_p3 = scmp.ne.s32.totalorder %s4049_s28, %s4045_s27  ;;  %p438_p4 = scmp.eq.s32.totalorder %s2955_s19, 1 }
  0x12   : > { %s4194_s22 = scalar_select %p419_p1, %s4053_s29, %s421_s20  }
  0x13   : > { %p4196_p5 = por %p432_p2, %p431_p0  ;;  %p4200_p6 = por %p438_p4, %p437_p3 }
  0x14   : > { %5034 = sst [smem:[#allocation9_spill]] %s4194_s22  ;;  %p2958_p7 = scmp.ge.s32.totalorder %s4057_s30, 1 }
  0x15   : > { %s5035_s2 = scalar_select %p4196_p5, 1, 0 }
  0x16   : > { %s5037_s23 = scalar_select %p4200_p6, 1, 0 }
  0x17   : > { %5036 = sst [smem:[#allocation10_spill]] %s5035_s2  ;;  %p514_p8 = scmp.lt.s32.totalorder %s4057_s30, 3 }
  0x18   : > { %5038 = sst [smem:[#allocation11_spill]] %s5037_s23 }
  0x19   : > { %p515_p9 = pnand %p2958_p7, %p514_p8 }
  0x1a   : > { %p567_p10 = scmp.lt.s32.totalorder (!%p515_p9), %s4179_s0, 1  ;;  %s5039_s26 = sld [smem:[#allocation13_spill]] (!%p515_p9) }
  0x1b   : > { %518 = sbr.rel (%p515_p9) target bundleno = 3703 (0xe77), region = 92  ;;  %s5040_s30 = sld [smem:[#allocation12_spill]] (!%p515_p9) }
  0x1c   : > { %s5041_s2 = sld [smem:[#allocation14_spill]] (!%p515_p9)  ;;  %s564_s27 = sand.u32 (!%p515_p9), 1, %s4049_s28  }
  0x1d   : > { %s5042_s3 = sld [smem:[#allocation15_spill]] (!%p515_p9)  ;;  %s3743_s22 = sshll.u32 (!%p515_p9), %s4179_s0, 3 }
  0x1e   : > { %s5043_s4 = sld [smem:[#allocation16_spill]] (!%p515_p9) }
  0x1f   : > { %s5046_s25 = sld [smem:[#allocation17_spill]] (!%p515_p9) }
  0x20   : > { %v596_v0 = vld [vmem:[%s5039_s26 + $0x78] sm:$0xff]  ;;  %v595_v1 = vld [vmem:[%s5039_s26 + $0x70] sm:$0xff]  ;;  %v4059_v2 = vmov 0   ;;  %s568_s21 = scalar_select %p567_p10, %s4179_s0, 1  ;;  %v594_v3 = vld [vmem:[%s5039_s26 + $0x68] sm:$0xff]  ;;  %v573_v18 = vlaneseq  ;;  %v4060_v21 = vmov 1.0  }
  0x21   : > { %3937 = vset.pattern.permute.xlu0 %v4059_v2  ;;  %598 = vmatpush.msra.mxu0 %v596_v0  ;;  %v593_v4 = vld [vmem:[%s5039_s26 + $0x60] sm:$0xff]  ;;  %v592_v5 = vld [vmem:[%s5039_s26 + $0x58] sm:$0xff]  ;;  %v591_v7 = vld [vmem:[%s5039_s26 + $0x50] sm:$0xff]  ;;  %vm624_vm1 = vcmask 523264   ;;  %v4061_v26 = vmov 64.0   ;;  %vm1214_vm6 = vcmask 130048  }
  0x22   : > { %s2960_s1 = sshll.u32 %s568_s21, 3  ;;  %v590_v8 = vld [vmem:[%s5039_s26 + $0x48] sm:$0xff]  ;;  %v589_v9 = vld [vmem:[%s5039_s26 + $0x40] sm:$0xff]  ;;  %v588_v10 = vld [vmem:[%s5039_s26 + $0x38] sm:$0xff]  ;;  %v4260_v19 = vand.u32 127, %v573_v18  ;;  %3951 = vrcp.f32 %v4061_v26  ;;  %vm1347_vm7 = vcmask 1043456  }
  0x23   : > { %599 = vmatpush.msra.mxu0 %v595_v1  ;;  %s570_s17 = scalar_lea.vmem %s5040_s30, %s2960_s1  ;;  %v587_v11 = vld [vmem:[%s5039_s26 + $0x30] sm:$0xff]  ;;  %v586_v12 = vld [vmem:[%s5039_s26 + $0x28] sm:$0xff]  ;;  %v585_v13 = vld [vmem:[%s5039_s26 + $0x20] sm:$0xff]  ;;  %vm1291_vm9 = vcmask 64512   ;;  %s2959_s30 = sshll.u32 %s564_s27, 3 }
  0x24   : > { %v572_v6 = vld [vmem:[%s570_s17] sm:$0xff]  ;;  %v584_v14 = vld [vmem:[%s5039_s26 + $0x18] sm:$0xff]  ;;  %v583_v15 = vld [vmem:[%s5039_s26 + $0x10] sm:$0xff]  ;;  %s5044_s17 = sld [smem:[#allocation18_spill]]  ;;  %s566_s19 = scalar_lea.vmem [#allocation2], %s2959_s30 }
  0x25   : > { %600 = vmatpush.msra.mxu0 %v594_v3  ;;  %576 = vperm.xlu0 %3937, %v572_v6   ;;  %v582_v16 = vld [vmem:[%s5039_s26 + $0x8] sm:$0xff]  ;;  %v581_v17 = vld [vmem:[%s5039_s26] sm:$0xff]  ;;  %v3749_v38 = vld [vmem:[%s4999_s5 + $0x18] sm:$0xff]  ;;  %s2893_s20 = sshll.u32 %s566_s19, 4  ;;  %s2894_s20 = int_to_ptr.vmem [resolvable:$true] %s2893_s20 }
  0x26   : > { %v597_v22 = vld [vmem:[%s5041_s2] sm:$0xff]  ;;  %v3753_v39 = vld [vmem:[%s4999_s5 + $0x38] sm:$0xff]  ;;  %726 = vmatpush.bf16.msra.mxu1 %v3749_v38  ;;  %v3748_v42 = vld [vmem:[%s4999_s5 + $0x10] sm:$0xff] }
  0x27   : > { %601 = vmatpush.msra.mxu0 %v593_v4  ;;  %v3757_v40 = vld [vmem:[%s4999_s5 + $0x58] sm:$0xff]  ;;  %763 = vmatpush.bf16.msra.mxu2 %v3753_v39  ;;  %v3752_v43 = vld [vmem:[%s4999_s5 + $0x30] sm:$0xff]  ;;  %v3747_v46 = vld [vmem:[%s4999_s5 + $0x8] sm:$0xff] }
  0x28   : > { %v3952_v27 = vpop.eup %3951  ;;  %v3773_v41 = vld [vmem:[%s5000_s6 + $0x58] sm:$0xff]  ;;  %800 = vmatpush.bf16.msra.mxu3 %v3757_v40  ;;  %v3756_v44 = vld [vmem:[%s4999_s5 + $0x50] sm:$0xff]  ;;  %v3751_v47 = vld [vmem:[%s4999_s5 + $0x28] sm:$0xff] }
  0x29   : > { %602 = vmatpush.msra.mxu0 %v592_v5  ;;  %v629_v28 = vmul.f32 64.0, %v3952_v27  ;;  %vm633_vm2 = vweird.f32 %v3952_v27  ;;  %v3772_v45 = vld [vmem:[%s5000_s6 + $0x50] sm:$0xff]  ;;  %v3755_v48 = vld [vmem:[%s4999_s5 + $0x48] sm:$0xff]  ;;  %v3746_v50 = vld [vmem:[%s4999_s5] sm:$0xff] }
  0x2a   : > { %727 = vmatpush.bf16.msra.mxu1 %v3748_v42  ;;  %v3771_v49 = vld [vmem:[%s5000_s6 + $0x48] sm:$0xff]  ;;  %v3750_v51 = vld [vmem:[%s4999_s5 + $0x20] sm:$0xff]  ;;  %v3761_v54 = vld [vmem:[%s4999_s5 + $0x78] sm:$0xff]  ;;  %s2891_s2 = scalar_lea.hbm %s5044_s17, %s3743_s22  ;;  %s4015_s23 = scalar_lea.hbm %s5044_s17, 16 }
  0x2b   : > { %603 = vmatpush.msra.mxu0 %v591_v7  ;;  %v630_v29 = vsub.f32 1.0, %v629_v28  ;;  %764 = vmatpush.bf16.msra.mxu2 %v3752_v43  ;;  %v3754_v52 = vld [vmem:[%s4999_s5 + $0x40] sm:$0xff]  ;;  %v3765_v55 = vld [vmem:[%s5000_s6 + $0x18] sm:$0xff]  ;;  %v3760_v60 = vld [vmem:[%s4999_s5 + $0x70] sm:$0xff]  ;;  %s2895_s29 = sshll.u32 %s2891_s2, 4  ;;  %s2896_s29 = int_to_ptr.hbm [resolvable:$true] %s2895_s29 }
  0x2c   : > { %801 = vmatpush.bf16.msra.mxu3 %v3756_v44  ;;  %v3770_v53 = vld [vmem:[%s5000_s6 + $0x40] sm:$0xff]  ;;  %v3769_v56 = vld [vmem:[%s5000_s6 + $0x38] sm:$0xff]  ;;  %v3764_v61 = vld [vmem:[%s5000_s6 + $0x10] sm:$0xff]  ;;  %s4009_s0 = sshra.s32 %s2896_s29, 4  ;;  %s4010_s0 = int_to_ptr.hbm [resolvable:$true] %s4009_s0 }
  0x2d   : > { %604 = vmatpush.msra.mxu0 %v590_v8  ;;  %v631_v30 = vmul.f32 %v3952_v27, %v630_v29  ;;  %v3789_v58 = vld [vmem:[%s5001_s7 + $0x58] sm:$0xff]  ;;  %v3768_v62 = vld [vmem:[%s5000_s6 + $0x30] sm:$0xff]  ;;  %v3759_v1 = vld [vmem:[%s4999_s5 + $0x68] sm:$0xff]  ;;  %p4016_p0 = scmp.lt.s32.totalorder %s4010_s0, %s5044_s17 }
  0x2e   : > { %728 = vmatpush.bf16.msra.mxu1 %v3747_v46  ;;  %v3788_v63 = vld [vmem:[%s5001_s7 + $0x50] sm:$0xff]  ;;  %v3763_v2 = vld [vmem:[%s5000_s6 + $0x8] sm:$0xff]  ;;  %v3758_v5 = vld [vmem:[%s4999_s5 + $0x60] sm:$0xff] }
  0x2f   : > { %605 = vmatpush.msra.mxu0 %v589_v9  ;;  %v632_v31 = vadd.f32 %v3952_v27, %v631_v30  ;;  %765 = vmatpush.bf16.msra.mxu2 %v3751_v47  ;;  %v3767_v3 = vld [vmem:[%s5000_s6 + $0x28] sm:$0xff]  ;;  %v3762_v6 = vld [vmem:[%s5000_s6] sm:$0xff]  ;;  %v3781_v26 = vld [vmem:[%s5001_s7 + $0x18] sm:$0xff] }
  0x30   : > { %802 = vmatpush.bf16.msra.mxu3 %v3755_v48  ;;  %v3787_v4 = vld [vmem:[%s5001_s7 + $0x48] sm:$0xff]  ;;  %v3766_v7 = vld [vmem:[%s5000_s6 + $0x20] sm:$0xff]  ;;  %v3776_v28 = vld [vmem:[%s5000_s6 + $0x70] sm:$0xff] }
  0x31   : > { %606 = vmatpush.msra.mxu0 %v588_v10  ;;  %v4270_v32 = vsel %vm633_vm2, %v3952_v27, %v632_v31  ;;  %v3786_v8 = vld [vmem:[%s5001_s7 + $0x40] sm:$0xff]  ;;  %v3785_v27 = vld [vmem:[%s5001_s7 + $0x38] sm:$0xff]  ;;  %v3780_v29 = vld [vmem:[%s5001_s7 + $0x10] sm:$0xff] }
  0x32   : > { %729 = vmatpush.bf16.msra.mxu1 %v3746_v50  ;;  %v3784_v30 = vld [vmem:[%s5001_s7 + $0x30] sm:$0xff]  ;;  %v3775_v31 = vld [vmem:[%s5000_s6 + $0x68] sm:$0xff]  ;;  %v3793_v38 = vld [vmem:[%s5001_s7 + $0x78] sm:$0xff] }
  0x33   : > { %607 = vmatpush.msra.mxu0 %v587_v11  ;;  %766 = vmatpush.bf16.msra.mxu2 %v3750_v51  ;;  %v3792_v39 = vld [vmem:[%s5001_s7 + $0x70] sm:$0xff]  ;;  %v3791_v40 = vld [vmem:[%s5001_s7 + $0x68] sm:$0xff] }
  0x34   : > { %803 = vmatpush.bf16.msra.mxu3 %v3754_v52 }
  0x35   : > { %608 = vmatpush.msra.mxu0 %v586_v12 }
  0x36   : > { %837 = vmatpush.bf16.msrb.mxu1 %v3761_v54 }
  0x37   : > { %609 = vmatpush.msra.mxu0 %v585_v13  ;;  %906 = vmatpush.bf16.msrb.mxu2 %v3765_v55 }
  0x38   : > { %943 = vmatpush.bf16.msrb.mxu3 %v3769_v56 }
  0x39   : > { %610 = vmatpush.msra.mxu0 %v584_v14 }
  0x3a   : > { %838 = vmatpush.bf16.msrb.mxu1 %v3760_v60 }
  0x3b   : > { %611 = vmatpush.msra.mxu0 %v583_v15  ;;  %907 = vmatpush.bf16.msrb.mxu2 %v3764_v61  ;;  %v3938_v15 = vld [vmem:[%s5042_s3] ss:$0 sm:$0xff] }
  0x3c   : > { %944 = vmatpush.bf16.msrb.mxu3 %v3768_v62 }
  0x3d   : > { %612 = vmatpush.msra.mxu0 %v582_v16 }
  0x3e   : > { %839 = vmatpush.bf16.msrb.mxu1 %v3759_v1 }
  0x3f   : > { %613 = vmatpush.msra.mxu0 %v581_v17  ;;  %908 = vmatpush.bf16.msrb.mxu2 %v3763_v2  ;;  %v3939_v17 = vld [vmem:[%s5043_s4] ss:$0 sm:$0xff] }
  0x40   : > { %945 = vmatpush.bf16.msrb.mxu3 %v3767_v3 }
  0x41   : > { %980 = vmatpush.bf16.msrb.mxu0 %v3773_v41  ;;  %v3790_v41 = vld [vmem:[%s5001_s7 + $0x60] sm:$0xff] }
  0x42   : > { %840 = vmatpush.bf16.msrb.mxu1 %v3758_v5 }
  0x43   : > { %909 = vmatpush.bf16.msrb.mxu2 %v3762_v6 }
  0x44   : > { %946 = vmatpush.bf16.msrb.mxu3 %v3766_v7 }
  0x45   : > { %981 = vmatpush.bf16.msrb.mxu0 %v3772_v45 }
  0x49   : > { %982 = vmatpush.bf16.msrb.mxu0 %v3771_v49 }
  0x4d   : > { %983 = vmatpush.bf16.msrb.mxu0 %v3770_v53 }
  0x97   : > { %v577_v20 = vpop.permute.xlu0 %576 }
  0x98   : > { %vm578_vm0 = vcmp.eq.s32.totalorder %v4260_v19, %v577_v20 }
  0x99   : > { %2962 = vmatmul.msk.f32.vlgmr.msra.gmra.mxu0 %vm578_vm0, %v4060_v21 }
  0x9a   : > { %1160 = vmatpush.bf16.msra.mxu0 %v3789_v58 }
  0x9e   : > { %1161 = vmatpush.bf16.msra.mxu0 %v3788_v63 }
  0xa2   : > { %1162 = vmatpush.bf16.msra.mxu0 %v3787_v4 }
  0xa6   : > { %1163 = vmatpush.bf16.msra.mxu0 %v3786_v8 }
 0x116   : > { %v615_v23 = vpop.f32.mrf.mxu0 }
 0x117   : > { %v4266_v24 = vadd.f32 %v615_v23, %v597_v22 }
 0x119   : > { %v625_v25 = vsel %vm624_vm1, %v4266_v24, 0.0 }
 0x11a   : > { %626 = vadd.xlane.f32.xlu0 %v625_v25  ;;  %v3777_v25 = vld [vmem:[%s5000_s6 + $0x78] sm:$0xff] }
 0x18d   : > { %v627_v33 = vpop.xlane.xlu0 %626 }
 0x18e   : > { %v635_v34 = vmul.f32 %v4270_v32, %v627_v33  ;;  %v3779_v33 = vld [vmem:[%s5001_s7 + $0x8] sm:$0xff] }
 0x190   : > { %v4274_v35 = vsub.f32 %v4266_v24, %v635_v34  ;;  %v3783_v34 = vld [vmem:[%s5001_s7 + $0x28] sm:$0xff] }
 0x192   : > { %v637_v36 = vmul.f32 %v4274_v35, %v4274_v35 }
 0x194   : > { %v638_v37 = vsel %vm624_vm1, %v637_v36, 0.0  ;;  %v3778_v36 = vld [vmem:[%s5001_s7] sm:$0xff] }
 0x195   : > { %639 = vadd.xlane.f32.xlu1 %v638_v37  ;;  %v3782_v37 = vld [vmem:[%s5001_s7 + $0x20] sm:$0xff] }
 0x208   : > { %v640_v57 = vpop.xlane.xlu1 %639 }
 0x209   : > { %v641_v59 = vmul.f32 %v640_v57, %v4270_v32 }
 0x20b   : > { %v642_v0 = vadd.f32 1e-05, %v641_v59 }
 0x20d   : > { %3953 = vrsqrt.f32 %v642_v0  ;;  %vm649_vm4 = vweird.f32 %v642_v0 }
 0x213   : > { %v3954_v9 = vpop.eup %3953 }
 0x214   : > { %v644_v10 = vmul.f32 %v3954_v9, %v642_v0  ;;  %vm650_vm3 = vweird.f32 %v3954_v9 }
 0x215   : > { %vm651_vm5 = vmor %vm649_vm4, %vm650_vm3 }
 0x216   : > { %v645_v11 = vmul.f32 %v3954_v9, %v644_v10 }
 0x218   : > { %v646_v12 = vmul.f32 0.5, %v645_v11 }
 0x21a   : > { %v647_v13 = vsub.f32 1.5, %v646_v12 }
 0x21c   : > { %v648_v14 = vmul.f32 %v3954_v9, %v647_v13 }
 0x21e   : > { %v652_v16 = vsel %vm651_vm5, %v3954_v9, %v648_v14 }
 0x21f   : > { %v653_v20 = vmul.f32 %v652_v16, %v4274_v35  ;;  %v3774_v35 = vld [vmem:[%s5000_s6 + $0x60] sm:$0xff] }
 0x221   : > { %v657_v21 = vmul.f32 %v3938_v15, %v653_v20 }
 0x223   : > { %v661_v22 = vadd.f32 %v3939_v17, %v657_v21 }
 0x225   : > { %v662_v23 = vpack.c.bf16 %v661_v22, %v661_v22 }
 0x227   : > { %2979 = vmatmul.msk.bf16.vlgmr.msra.gmra.mxu1 %vm624_vm1, %v662_v23  ;;  %2996 = vmatmul.msk.bf16.vlgmr.msra.gmra.mxu2 %vm624_vm1, %v662_v23 }
 0x228   : > { %3013 = vmatmul.msk.bf16.vlgmr.msra.gmra.mxu3 %vm624_vm1, %v662_v23  ;;  %3081 = vmatmul.msk.bf16.vlgmr.msrb.gmra.mxu0 %vm624_vm1, %v662_v23 }
 0x229   : > { %1017 = vmatpush.bf16.msra.mxu1 %v3777_v25  ;;  %1086 = vmatpush.bf16.msra.mxu2 %v3781_v26 }
 0x22a   : > { %1123 = vmatpush.bf16.msra.mxu3 %v3785_v27  ;;  %v619_v27 = vshrl.u32 %v573_v18, 7 }
 0x22c   : > { %vm620_vm8 = vcmp.le.s32.totalorder %v4260_v19, %v619_v27 }
 0x22d   : > { %1018 = vmatpush.bf16.msra.mxu1 %v3776_v28  ;;  %1087 = vmatpush.bf16.msra.mxu2 %v3780_v29  ;;  %v4062_v28 = vmov -1e+30  }
 0x22e   : > { %1124 = vmatpush.bf16.msra.mxu3 %v3784_v30  ;;  %v4457_v29 = vsel %vm620_vm8, 0.0, %v4062_v28 }
 0x231   : > { %1019 = vmatpush.bf16.msra.mxu1 %v3775_v31  ;;  %1088 = vmatpush.bf16.msra.mxu2 %v3779_v33 }
 0x232   : > { %1125 = vmatpush.bf16.msra.mxu3 %v3783_v34 }
 0x235   : > { %1020 = vmatpush.bf16.msra.mxu1 %v3774_v35  ;;  %1089 = vmatpush.bf16.msra.mxu2 %v3778_v36 }
 0x236   : > { %1126 = vmatpush.bf16.msra.mxu3 %v3782_v37 }
 0x237   : > { %3030 = vmatmul.msk.bf16.vlgmr.msrb.gmra.mxu1 %vm624_vm1, %v662_v23  ;;  %3047 = vmatmul.msk.bf16.vlgmr.msrb.gmra.mxu2 %vm624_vm1, %v662_v23 }
 0x238   : > { %3064 = vmatmul.msk.bf16.vlgmr.msrb.gmra.mxu3 %vm624_vm1, %v662_v23  ;;  %3149 = vmatmul.msk.bf16.vlgmr.msra.gmra.mxu0 %vm624_vm1, %v662_v23 }
 0x239   : > { %1197 = vmatpush.bf16.msrb.mxu1 %v3793_v38 }
 0x23d   : > { %1198 = vmatpush.bf16.msrb.mxu1 %v3792_v39 }
 0x241   : > { %1199 = vmatpush.bf16.msrb.mxu1 %v3791_v40 }
 0x245   : > { %1200 = vmatpush.bf16.msrb.mxu1 %v3790_v41 }
 0x247   : > { %3098 = vmatmul.msk.bf16.vlgmr.msra.gmra.mxu1 %vm624_vm1, %v662_v23  ;;  %3115 = vmatmul.msk.bf16.vlgmr.msra.gmra.mxu2 %vm624_vm1, %v662_v23 }
 0x248   : > { %3132 = vmatmul.msk.bf16.vlgmr.msra.gmra.mxu3 %vm624_vm1, %v662_v23 }
 0x257   : > { %3166 = vmatmul.msk.bf16.vlgmr.msrb.gmra.mxu1 %vm624_vm1, %v662_v23 }
 0x2a4   : > { %v731_v42 = vpop.f32.mrf.mxu1 }
 0x2a5   : > { %v985_v43 = vpop.f32.mrf.mxu0  ;;  %v1206_v2 = vpack.c.bf16 %v731_v42, %v731_v42 }
 0x2a6   : > { %v1212_v44 = vpack.c.bf16 %v985_v43, %v985_v43 }
 0x2a8   : > { %v1257_v45 = vsel %vm1214_vm6, %v1212_v44, 0 }
 0x2a9   : > { %1266 = vmatpush.bf16.xpose.msrb.mxu0 %v1257_v45 }
 0x2aa   : > { %v768_v46 = vpop.f32.mrf.mxu2 }
 0x2ab   : > { %v805_v47 = vpop.f32.mrf.mxu3  ;;  %v1207_v4 = vpack.c.bf16 %v768_v46, %v768_v46 }
 0x2ac   : > { %v733_v48 = vpop.f32.mrf.mxu1  ;;  %v1208_v50 = vpack.c.bf16 %v805_v47, %v805_v47 }
 0x2ad   : > { %v987_v49 = vpop.f32.mrf.mxu0 }
 0x2b0   : > { %3169 = vmatmul.msk.bf16.vlgmr.msrb.gmra.mxu0 %vm1214_vm6, %v1208_v50 }
 0x2b2   : > { %v770_v51 = vpop.f32.mrf.mxu2 }
 0x2b3   : > { %v807_v52 = vpop.f32.mrf.mxu3 }
 0x2b4   : > { %v842_v53 = vpop.f32.mrf.mxu1 }
 0x2b5   : > { %v1165_v54 = vpop.f32.mrf.mxu0  ;;  %v1209_v13 = vpack.c.bf16 %v842_v53, %v842_v53 }
 0x2b6   : > { %v1342_v55 = vpack.c.bf16 %v1165_v54, %v1165_v54 }
 0x2b8   : > { %v1387_v56 = vsel %vm1347_vm7, %v1342_v55, 0 }
 0x2b9   : > { %1396 = vmatpush.bf16.msra.mxu0 %v1387_v56 }
 0x2ba   : > { %v911_v57 = vpop.f32.mrf.mxu2 }
 0x2bb   : > { %v1210_v58 = vpack.c.bf16 %v911_v57, %v911_v57  ;;  %v948_v59 = vpop.f32.mrf.mxu3 }
 0x2bc   : > { %v1211_v60 = vpack.c.bf16 %v948_v59, %v948_v59  ;;  %v844_v61 = vpop.f32.mrf.mxu1 }
 0x2bd   : > { %v1219_v62 = vsel %vm1214_vm6, %v1210_v58, 0  ;;  %v1167_v63 = vpop.f32.mrf.mxu0 }
 0x2be   : > { %v1238_v0 = vsel %vm1214_vm6, %v1211_v60, 0  ;;  %1228 = vmatpush.bf16.xpose.msrb.mxu2 %v1219_v62 }
 0x2bf   : > { %1247 = vmatpush.bf16.xpose.msrb.mxu3 %v1238_v0 }
 0x2c2   : > { %v913_v1 = vpop.f32.mrf.mxu2 }
 0x2c3   : > { %v950_v3 = vpop.f32.mrf.mxu3 }
 0x2c4   : > { %v1022_v5 = vpop.f32.mrf.mxu1 }
 0x2c5   : > { %v1213_v6 = vpack.c.bf16 %v1022_v5, %v1022_v5  ;;  %3167 = vmatmul.msk.bf16.vlgmr.msrb.gmra.mxu2 %vm1214_vm6, %v1206_v2 }
 0x2c6   : > { %3168 = vmatmul.msk.bf16.vlgmr.msrb.gmra.mxu3 %vm1214_vm6, %v1207_v4 }
 0x2c7   : > { %v1276_v7 = vsel %vm1214_vm6, %v1213_v6, 0 }
 0x2c8   : > { %1285 = vmatpush.bf16.xpose.msra.mxu1 %v1276_v7 }
 0x2ca   : > { %v1091_v8 = vpop.f32.mrf.mxu2 }
 0x2cb   : > { %v1340_v9 = vpack.c.bf16 %v1091_v8, %v1091_v8  ;;  %v1128_v10 = vpop.f32.mrf.mxu3 }
 0x2cc   : > { %v1341_v11 = vpack.c.bf16 %v1128_v10, %v1128_v10  ;;  %v1024_v12 = vpop.f32.mrf.mxu1 }
 0x2cd   : > { %v1349_v14 = vsel %vm1347_vm7, %v1340_v9, 0 }
 0x2ce   : > { %v1368_v15 = vsel %vm1347_vm7, %v1341_v11, 0  ;;  %1358 = vmatpush.bf16.msra.mxu2 %v1349_v14 }
 0x2cf   : > { %1377 = vmatpush.bf16.msra.mxu3 %v1368_v15  ;;  %3170 = vmatmul.msk.bf16.vlgmr.msra.gmra.mxu1 %vm1214_vm6, %v1209_v13 }
 0x2d2   : > { %v1093_v16 = vpop.f32.mrf.mxu2 }
 0x2d3   : > { %v1130_v17 = vpop.f32.mrf.mxu3 }
 0x2d4   : > { %v1202_v20 = vpop.f32.mrf.mxu1 }
 0x2d5   : > { %v1343_v21 = vpack.c.bf16 %v1202_v20, %v1202_v20 }
 0x2d7   : > { %v1406_v22 = vsel %vm1347_vm7, %v1343_v21, 0 }
 0x2d8   : > { %1415 = vmatpush.bf16.msrb.mxu1 %v1406_v22 }
 0x2dc   : > { %v1204_v23 = vpop.f32.mrf.mxu1 }
 0x32d   : > { %v1268_v25 = vpop.f32.mrf.mxu0 }
 0x32e   : > { %v1269_v19 = vadd.f32 %v1268_v25, %v4457_v29 }
 0x330   : > { %v1298_v41 = vsel %vm1291_vm9, %v1269_v19, -inf }
 0x335   : > { %v1270_v26 = vpop.f32.mrf.mxu0 }
 0x348   : > { %v1230_v30 = vpop.f32.mrf.mxu2 }
 0x349   : > { %v1231_v31 = vadd.f32 %v1230_v30, %v4457_v29  ;;  %v1249_v33 = vpop.f32.mrf.mxu3 }
 0x34a   : > { %v1250_v34 = vadd.f32 %v1249_v33, %v4457_v29 }
 0x34b   : > { %v1292_v35 = vsel %vm1291_vm9, %v1231_v31, -inf }
 0x34c   : > { %v1295_v36 = vsel %vm1291_vm9, %v1250_v34, -inf  ;;  %1293 = vmax.xlane.f32.xlu1 %v1292_v35  ;;  %v1287_v37 = vpop.f32.mrf.mxu1 }
 0x34d   : > { %1296 = vmax.xlane.f32.xlu2 %v1295_v36  ;;  %v1288_v18 = vadd.f32 %v1287_v37, %v4457_v29 }
 0x34f   : > { %v1301_v40 = vsel %vm1291_vm9, %v1288_v18, -inf }
 0x350   : > { %v1232_v38 = vpop.f32.mrf.mxu2 }
 0x351   : > { %v1251_v39 = vpop.f32.mrf.mxu3 }
 0x354   : > { %v1289_v42 = vpop.f32.mrf.mxu1  ;;  %1302 = vmax.xlane.f32.xlu1 %v1301_v40  ;;  %v3801_v40 = vld [vmem:[%s5004_s10 + $0x34] sm:$0xf0] }
 0x355   : > { %1299 = vmax.xlane.f32.xlu2 %v1298_v41  ;;  %v3800_v41 = vld [vmem:[%s5004_s10 + $0x34] sm:$0xf] }
 0x3bf   : > { %v1294_v43 = vpop.xlane.xlu1 %1293 }
 0x3c0   : > { %v1297_v44 = vpop.xlane.xlu2 %1296  ;;  %v1304_v45 = vsub.f32 %v1231_v31, %v1294_v43  ;;  %v3203_v43 = vld [vmem:[%s5004_s10 + $0x38] sm:$0xf0] }
 0x3c1   : > { %v1305_v46 = vsub.f32 %v1250_v34, %v1297_v44  ;;  %v3206_v44 = vor.u32 %v3800_v41, %v3203_v43 }
 0x3c2   : > { %v1308_v47 = vmul.f32 1.442695, %v1304_v45  ;;  %v3193_v45 = vld [vmem:[%s5004_s10 + $0x20] sm:$0xf] }
 0x3c3   : > { %v1310_v48 = vmul.f32 1.442695, %v1305_v46  ;;  %1536 = vmatpush.bf16.msrb.mxu3 %v3206_v44  ;;  %v3799_v46 = vld [vmem:[%s5004_s10 + $0x24] sm:$0xf0] }
 0x3c4   : > { %3955 = vpow2.f32 %v1308_v47  ;;  %v3798_v47 = vld [vmem:[%s5004_s10 + $0x24] sm:$0xf] }
 0x3c5   : > { %3957 = vpow2.f32 %v1310_v48  ;;  %v3194_v48 = vor.u32 %v3799_v46, %v3193_v45 }
 0x3c7   : > { %v1303_v49 = vpop.xlane.xlu1 %1302 }
 0x3c8   : > { %v1300_v50 = vpop.xlane.xlu2 %1299  ;;  %v1307_v51 = vsub.f32 %v1288_v18, %v1303_v49  ;;  %v3195_v49 = vld [vmem:[%s5004_s10 + $0x28] sm:$0xf0] }
 0x3c9   : > { %v1306_v52 = vsub.f32 %v1269_v19, %v1300_v50  ;;  %v3198_v50 = vor.u32 %v3798_v47, %v3195_v49  ;;  %v3942_v47 = vld [vmem:[%s5007_s13] ss:$0 sm:$0xff] }
 0x3ca   : > { %v3956_v53 = vpop.eup %3955  ;;  %v1314_v54 = vmul.f32 1.442695, %v1307_v51  ;;  %v3185_v51 = vld [vmem:[%s5004_s10 + $0x10] sm:$0xf] }
 0x3cb   : > { %v3958_v55 = vpop.eup %3957  ;;  %v1312_v56 = vmul.f32 1.442695, %v1306_v52  ;;  %v1316_v57 = vsel %vm1291_vm9, %v3956_v53, 0.0  ;;  %1537 = vmatpush.bf16.msrb.mxu3 %v3198_v50  ;;  %v3797_v52 = vld [vmem:[%s5004_s10 + $0x14] sm:$0xf0] }
 0x3cc   : > { %3959 = vpow2.f32 %v1314_v54  ;;  %1317 = vadd.xlane.f32.xlu2 %v1316_v57  ;;  %v1319_v58 = vsel %vm1291_vm9, %v3958_v55, 0.0  ;;  %v3186_v54 = vor.u32 %v3797_v52, %v3185_v51  ;;  %v3177_v57 = vld [vmem:[%s5004_s10] sm:$0xf] }
 0x3cd   : > { %3961 = vpow2.f32 %v1312_v56  ;;  %1320 = vadd.xlane.f32.xlu1 %v1319_v58  ;;  %v3795_v58 = vld [vmem:[%s5004_s10 + $0x4] sm:$0xf0] }
 0x3d2   : > { %v3960_v59 = vpop.eup %3959 }
 0x3d3   : > { %v3962_v60 = vpop.eup %3961  ;;  %v1325_v61 = vsel %vm1291_vm9, %v3960_v59, 0.0 }
 0x3d4   : > { %v1322_v62 = vsel %vm1291_vm9, %v3962_v60, 0.0 }
 0x3d5   : > { %1323 = vadd.xlane.f32.xlu2 %v1322_v62  ;;  %1326 = vadd.xlane.f32.xlu1 %v1325_v61  ;;  %v3179_v61 = vld [vmem:[%s5004_s10 + $0x8] sm:$0xf0] }
 0x43f   : > { %v1318_v63 = vpop.xlane.xlu2 %1317 }
 0x440   : > { %3963 = vrcp.f32 %v1318_v63  ;;  %v1321_v0 = vpop.xlane.xlu1 %1320  ;;  %v3809_v63 = vld [vmem:[%s5006_s12 + $0x38] sm:$0xff] }
 0x441   : > { %3965 = vrcp.f32 %v1321_v0  ;;  %v3817_v0 = vld [vmem:[%s5006_s12 + $0x78] sm:$0xff]  ;;  %1681 = vmatpush.bf16.msrb.mxu0 %v3809_v63 }
 0x442   : > { %1694 = vmatpush.bf16.msra.mxu1 %v3817_v0  ;;  %v3841_v63 = vld [vmem:[%s5000_s6 + $0xb8] sm:$0xff]  ;;  %v3820_v0 = vld [vmem:[%s4999_s5 + $0x90] sm:$0xff] }
 0x446   : > { %v3964_v1 = vpop.eup %3963 }
 0x447   : > { %v3966_v2 = vpop.eup %3965  ;;  %v1332_v3 = vmul.f32 %v3964_v1, %v3956_v53  ;;  %v3796_v53 = vld [vmem:[%s5004_s10 + $0x14] sm:$0xf] }
 0x448   : > { %v1333_v4 = vmul.f32 %v3966_v2, %v3958_v55  ;;  %v1324_v5 = vpop.xlane.xlu2 %1323  ;;  %v1327_v6 = vpop.xlane.xlu1 %1326  ;;  %v3187_v55 = vld [vmem:[%s5004_s10 + $0x18] sm:$0xf0] }
 0x449   : > { %v1336_v7 = vpack.c.bf16 %v1332_v3, %v1332_v3  ;;  %3967 = vrcp.f32 %v1324_v5  ;;  %v3190_v56 = vor.u32 %v3796_v53, %v3187_v55  ;;  %v3808_v3 = vld [vmem:[%s5006_s12 + $0x30] sm:$0xff] }
 0x44a   : > { %v1337_v8 = vpack.c.bf16 %v1333_v4, %v1333_v4  ;;  %3969 = vrcp.f32 %v1327_v6  ;;  %v3816_v4 = vld [vmem:[%s5006_s12 + $0x70] sm:$0xff]  ;;  %1682 = vmatpush.bf16.msrb.mxu0 %v3808_v3  ;;  %v3807_v6 = vld [vmem:[%s5006_s12 + $0x28] sm:$0xff] }
 0x44b   : > { %3171 = vmatmul.msk.bf16.vlgmr.msra.gmra.mxu2 %vm1291_vm9, %v1336_v7  ;;  %1538 = vmatpush.bf16.msrb.mxu3 %v3190_v56  ;;  %v3815_v7 = vld [vmem:[%s5006_s12 + $0x68] sm:$0xff]  ;;  %v3840_v3 = vld [vmem:[%s5000_s6 + $0xb0] sm:$0xff] }
 0x44c   : > { %3172 = vmatmul.msk.bf16.vlgmr.msra.gmra.mxu3 %vm1291_vm9, %v1337_v8  ;;  %1695 = vmatpush.bf16.msra.mxu1 %v3816_v4  ;;  %v3806_v8 = vld [vmem:[%s5006_s12 + $0x20] sm:$0xff]  ;;  %v3819_v4 = vld [vmem:[%s4999_s5 + $0x88] sm:$0xff] }
 0x44e   : > { %1683 = vmatpush.bf16.msrb.mxu0 %v3807_v6  ;;  %v3835_v6 = vld [vmem:[%s5000_s6 + $0x88] sm:$0xff] }
 0x44f   : > { %v3968_v9 = vpop.eup %3967 }
 0x450   : > { %v3970_v10 = vpop.eup %3969  ;;  %v1334_v11 = vmul.f32 %v3968_v9, %v3962_v60  ;;  %v3178_v60 = vor.u32 %v3795_v58, %v3177_v57  ;;  %1696 = vmatpush.bf16.msra.mxu1 %v3815_v7  ;;  %v3814_v9 = vld [vmem:[%s5006_s12 + $0x60] sm:$0xff]  ;;  %v3839_v7 = vld [vmem:[%s5000_s6 + $0xa8] sm:$0xff] }
 0x451   : > { %v1335_v12 = vmul.f32 %v3970_v10, %v3960_v59  ;;  %v3794_v59 = vld [vmem:[%s5004_s10 + $0x4] sm:$0xf] }
 0x452   : > { %v1338_v13 = vpack.c.bf16 %v1334_v11, %v1334_v11  ;;  %v3182_v62 = vor.u32 %v3794_v59, %v3179_v61  ;;  %1684 = vmatpush.bf16.msrb.mxu0 %v3806_v8  ;;  %v3825_v61 = vld [vmem:[%s4999_s5 + $0xb8] sm:$0xff]  ;;  %v3818_v8 = vld [vmem:[%s4999_s5 + $0x80] sm:$0xff] }
 0x453   : > { %v1339_v14 = vpack.c.bf16 %v1335_v12, %v1335_v12  ;;  %v3805_v12 = vld [vmem:[%s5006_s12 + $0x18] sm:$0xff] }
 0x454   : > { %3173 = vmatmul.msk.bf16.vlgmr.msra.gmra.mxu0 %vm1291_vm9, %v1338_v13  ;;  %1539 = vmatpush.bf16.msrb.mxu3 %v3182_v62  ;;  %v3813_v13 = vld [vmem:[%s5006_s12 + $0x58] sm:$0xff] }
 0x455   : > { %3174 = vmatmul.msk.bf16.vlgmr.msrb.gmra.mxu1 %vm1291_vm9, %v1339_v14  ;;  %v3837_v62 = vld [vmem:[%s5000_s6 + $0x98] sm:$0xff] }
 0x456   : > { %1697 = vmatpush.bf16.msra.mxu1 %v3814_v9  ;;  %1685 = vmatpush.bf16.msrb.mxu0 %v3805_v12  ;;  %v3822_v9 = vld [vmem:[%s4999_s5 + $0xa0] sm:$0xff]  ;;  %v3829_v12 = vld [vmem:[%s4999_s5 + $0xd8] sm:$0xff] }
 0x458   : > { %1844 = vmatpush.bf16.msra.mxu3 %v3825_v61  ;;  %v3858_v61 = vld [vmem:[%s5001_s7 + $0xc0] sm:$0xff] }
 0x45a   : > { %1698 = vmatpush.bf16.msra.mxu1 %v3813_v13  ;;  %v3833_v13 = vld [vmem:[%s4999_s5 + $0xf8] sm:$0xff] }
 0x4ce   : > { %v1360_v15 = vpop.f32.mrf.mxu2 }
 0x4cf   : > { %v1421_v16 = vsel %vm624_vm1, %v1360_v15, 0.0  ;;  %v1379_v17 = vpop.f32.mrf.mxu3 }
 0x4d0   : > { %v1422_v20 = vsel %vm624_vm1, %v1379_v17, 0.0  ;;  %v3812_v17 = vld [vmem:[%s5006_s12 + $0x50] sm:$0xff] }
 0x4d1   : > { %v1423_v21 = vadd.f32 %v1422_v20, %v1421_v16  ;;  %v1398_v22 = vpop.f32.mrf.mxu0  ;;  %v3804_v16 = vld [vmem:[%s5006_s12 + $0x10] sm:$0xff]  ;;  %1699 = vmatpush.bf16.msra.mxu1 %v3812_v17 }
 0x4d2   : > { %v1424_v23 = vsel %vm624_vm1, %v1398_v22, 0.0  ;;  %v1417_v25 = vpop.f32.mrf.mxu1  ;;  %v3940_v22 = vld [vmem:[%s5002_s8] ss:$0 sm:$0xff]  ;;  %1686 = vmatpush.bf16.msrb.mxu0 %v3804_v16  ;;  %v3857_v16 = vld [vmem:[%s5001_s7 + $0xb8] sm:$0xff] }
 0x4d3   : > { %v1425_v26 = vadd.f32 %v1424_v23, %v1423_v21  ;;  %v1426_v27 = vsel %vm624_vm1, %v1417_v25, 0.0 }
 0x4d5   : > { %v1427_v28 = vadd.f32 %v1426_v27, %v1425_v26  ;;  %v3941_v26 = vld [vmem:[%s5003_s9] ss:$0 sm:$0xff] }
 0x4d6   : > { %v1362_v30 = vpop.f32.mrf.mxu2 }
 0x4d7   : > { %v4480_v31 = vadd.f32 %v1427_v28, %v4266_v24  ;;  %v1381_v33 = vpop.f32.mrf.mxu3  ;;  %v3201_v24 = vld [vmem:[%s5004_s10 + $0x30] sm:$0xf] }
 0x4d8   : > { %v3202_v42 = vor.u32 %v3801_v40, %v3201_v24  ;;  %v3803_v33 = vld [vmem:[%s5006_s12 + $0x8] sm:$0xff] }
 0x4d9   : > { %v1400_v34 = vpop.f32.mrf.mxu0  ;;  %v1431_v35 = vsel %vm624_vm1, %v4480_v31, 0.0  ;;  %1687 = vmatpush.bf16.msrb.mxu0 %v3803_v33  ;;  %v3826_v33 = vld [vmem:[%s4999_s5 + $0xc0] sm:$0xff] }
 0x4da   : > { %v1419_v36 = vpop.f32.mrf.mxu1  ;;  %1432 = vadd.xlane.f32.xlu2 %v1431_v35  ;;  %1523 = vmatpush.bf16.msrb.mxu2 %v3202_v42  ;;  %v3811_v34 = vld [vmem:[%s5006_s12 + $0x48] sm:$0xff]  ;;  %v3802_v35 = vld [vmem:[%s5006_s12] sm:$0xff] }
 0x4db   : > { %1700 = vmatpush.bf16.msra.mxu1 %v3811_v34  ;;  %v3810_v36 = vld [vmem:[%s5006_s12 + $0x40] sm:$0xff] }
 0x4dc   : > { %v3830_v34 = vld [vmem:[%s4999_s5 + $0xe0] sm:$0xff] }
 0x4dd   : > { %1688 = vmatpush.bf16.msrb.mxu0 %v3802_v35  ;;  %v3850_v35 = vld [vmem:[%s5001_s7 + $0x80] sm:$0xff] }
 0x4de   : > { %1524 = vmatpush.bf16.msrb.mxu2 %v3194_v48 }
 0x4df   : > { %1701 = vmatpush.bf16.msra.mxu1 %v3810_v36  ;;  %v3854_v36 = vld [vmem:[%s5001_s7 + $0xa0] sm:$0xff] }
 0x4e1   : > { %1988 = vmatpush.bf16.msra.mxu0 %v3837_v62  ;;  %v3862_v62 = vld [vmem:[%s5001_s7 + $0xe0] sm:$0xff] }
 0x4e2   : > { %1525 = vmatpush.bf16.msrb.mxu2 %v3186_v54 }
 0x4e3   : > { %2025 = vmatpush.bf16.msrb.mxu1 %v3841_v63 }
 0x4e6   : > { %1526 = vmatpush.bf16.msrb.mxu2 %v3178_v60 }
 0x4e7   : > { %2026 = vmatpush.bf16.msrb.mxu1 %v3840_v3 }
 0x4eb   : > { %2027 = vmatpush.bf16.msrb.mxu1 %v3839_v7 }
 0x54d   : > { %v1433_v37 = vpop.xlane.xlu2 %1432 }
 0x54e   : > { %v1434_v18 = vmul.f32 %v1433_v37, %v4270_v32  ;;  %v1470_v37 = vld [vmem:[%s5005_s11] sm:$0x3] }
 0x550   : > { %v4486_v19 = vsub.f32 %v4480_v31, %v1434_v18  ;;  %v1472_v18 = vperm.slane %v1470_v37, 0 }
 0x552   : > { %v1436_v38 = vmul.f32 %v4486_v19, %v4486_v19 }
 0x554   : > { %v1437_v39 = vsel %vm624_vm1, %v1436_v38, 0.0 }
 0x555   : > { %1438 = vadd.xlane.f32.xlu1 %v1437_v39 }
 0x5c8   : > { %v1439_v1 = vpop.xlane.xlu1 %1438 }
 0x5c9   : > { %v1440_v2 = vmul.f32 %v1439_v1, %v4270_v32  ;;  %v3824_v1 = vld [vmem:[%s4999_s5 + $0xb0] sm:$0xff] }
 0x5ca   : > { %1845 = vmatpush.bf16.msra.mxu3 %v3824_v1 }
 0x5cb   : > { %v1441_v5 = vadd.f32 1e-05, %v1440_v2  ;;  %v3836_v2 = vld [vmem:[%s5000_s6 + $0x90] sm:$0xff] }
 0x5cc   : > { %1989 = vmatpush.bf16.msra.mxu0 %v3836_v2 }
 0x5cd   : > { %3971 = vrsqrt.f32 %v1441_v5  ;;  %vm1448_vm11 = vweird.f32 %v1441_v5 }
 0x5d0   : > { %1990 = vmatpush.bf16.msra.mxu0 %v3835_v6 }
 0x5d3   : > { %v3972_v10 = vpop.eup %3971 }
 0x5d4   : > { %v1443_v11 = vmul.f32 %v3972_v10, %v1441_v5  ;;  %vm1449_vm10 = vweird.f32 %v3972_v10  ;;  %v3823_v5 = vld [vmem:[%s4999_s5 + $0xa8] sm:$0xff] }
 0x5d5   : > { %vm1450_vm12 = vmor %vm1448_vm11, %vm1449_vm10  ;;  %1846 = vmatpush.bf16.msra.mxu3 %v3823_v5 }
 0x5d6   : > { %v1444_v14 = vmul.f32 %v3972_v10, %v1443_v11  ;;  %v3838_v11 = vld [vmem:[%s5000_s6 + $0xa0] sm:$0xff] }
 0x5d7   : > { %2028 = vmatpush.bf16.msrb.mxu1 %v3838_v11 }
 0x5d8   : > { %v1445_v15 = vmul.f32 0.5, %v1444_v14  ;;  %v3853_v14 = vld [vmem:[%s5001_s7 + $0x98] sm:$0xff] }
 0x5d9   : > { %1847 = vmatpush.bf16.msra.mxu3 %v3822_v9 }
 0x5da   : > { %v1446_v20 = vsub.f32 1.5, %v1445_v15 }
 0x5dc   : > { %v1447_v21 = vmul.f32 %v3972_v10, %v1446_v20  ;;  %v3828_v20 = vld [vmem:[%s4999_s5 + $0xd0] sm:$0xff] }
 0x5de   : > { %v1451_v23 = vsel %vm1450_vm12, %v3972_v10, %v1447_v21  ;;  %v3834_v10 = vld [vmem:[%s5000_s6 + $0x80] sm:$0xff]  ;;  %v3832_v21 = vld [vmem:[%s4999_s5 + $0xf0] sm:$0xff] }
 0x5df   : > { %v1452_v25 = vmul.f32 %v1451_v23, %v4486_v19  ;;  %v1473_v19 = vperm.slane %v1470_v37, 1  ;;  %1991 = vmatpush.bf16.msra.mxu0 %v3834_v10  ;;  %v3856_v23 = vld [vmem:[%s5001_s7 + $0xb0] sm:$0xff] }
 0x5e1   : > { %v1456_v27 = vmul.f32 %v3940_v22, %v1452_v25  ;;  %v3852_v22 = vld [vmem:[%s5001_s7 + $0x90] sm:$0xff] }
 0x5e3   : > { %v1460_v28 = vadd.f32 %v3941_v26, %v1456_v27  ;;  %v3827_v26 = vld [vmem:[%s4999_s5 + $0xc8] sm:$0xff] }
 0x5e4   : > { %v3831_v27 = vld [vmem:[%s4999_s5 + $0xe8] sm:$0xff] }
 0x5e5   : > { %v1461_v30 = vpack.c.bf16 %v1460_v28, %v1460_v28  ;;  %v3851_v28 = vld [vmem:[%s5001_s7 + $0x88] sm:$0xff] }
 0x5e7   : > { %3207 = vmatmul.msk.bf16.vlgmr.msrb.gmra.mxu2 %vm624_vm1, %v1461_v30  ;;  %3208 = vmatmul.msk.bf16.vlgmr.msrb.gmra.mxu3 %vm624_vm1, %v1461_v30  ;;  %v3855_v30 = vld [vmem:[%s5001_s7 + $0xa8] sm:$0xff] }
 0x5e8   : > { %1918 = vmatpush.bf16.msrb.mxu3 %v3833_v13 }
 0x5ec   : > { %1919 = vmatpush.bf16.msrb.mxu3 %v3832_v21 }
 0x5f0   : > { %1920 = vmatpush.bf16.msrb.mxu3 %v3831_v27 }
 0x5f4   : > { %1921 = vmatpush.bf16.msrb.mxu3 %v3830_v34 }
 0x66a   : > { %v1528_v38 = vpop.f32.mrf.mxu2  ;;  %v1541_v39 = vpop.f32.mrf.mxu3 }
 0x66b   : > { %v1529_v24 = vadd.f32 %v1528_v38, %v1472_v18  ;;  %v1542_v40 = vadd.f32 %v1541_v39, %v1473_v19 }
 0x66d   : > { %v1545_v41 = vmax.f32 %v1529_v24, 0.0  ;;  %v1546_v42 = vmax.f32 %v1542_v40, 0.0  ;;  %v3943_v40 = vld [vmem:[%s5042_s3 + $0x1] ss:$0 sm:$0xff]  ;;  %s2881_s3 = scalar_lea.sflag [#allocation3], %s564_s27 }
 0x66f   : > { %v1547_v43 = vpack.c.bf16 %v1545_v41, %v1545_v41  ;;  %v1548_v44 = vpack.c.bf16 %v1546_v42, %v1546_v42  ;;  %v3944_v42 = vld [vmem:[%s5043_s4 + $0x1] ss:$0 sm:$0xff]  ;;  %s4011_s4 = scalar_lea.hbm %s4010_s0, 8 }
 0x670   : > { %p4012_p11 = scmp.ne.s32.totalorder %s4010_s0, %s4011_s4  ;;  %p4017_p1 = scmp.lt.s32.totalorder %s4015_s23, %s4011_s4 }
 0x671   : > { %1689 = vmatmul.bf16.vlgmr.msrb.gmra.mxu0 %v1547_v43  ;;  %1702 = vmatmul.bf16.vlgmr.msra.gmra.mxu1 %v1548_v44 }
 0x672   : > { %v1530_v45 = vpop.f32.mrf.mxu2  ;;  %v1543_v46 = vpop.f32.mrf.mxu3  ;;  %2169 = vmatpush.bf16.msrb.mxu0 %v3853_v14  ;;  %2206 = vmatpush.bf16.msra.mxu1 %v3857_v16  ;;  %p4013_p12 = pnand %p4012_p11, %p4196_p5  ;;  %p4018_p2 = por %p4017_p1, %p4016_p0 }
 0x674   : > { %p4014_p13 = pneg %p4013_p12 }
 0x676   : > { %2170 = vmatpush.bf16.msrb.mxu0 %v3852_v22  ;;  %2207 = vmatpush.bf16.msra.mxu1 %v3856_v23  ;;  %p4019_p3 = pnand %p4018_p2, %p4014_p13 }
 0x67a   : > { %2171 = vmatpush.bf16.msrb.mxu0 %v3851_v28  ;;  %2208 = vmatpush.bf16.msra.mxu1 %v3855_v30 }
 0x67e   : > { %2172 = vmatpush.bf16.msrb.mxu0 %v3850_v35  ;;  %2209 = vmatpush.bf16.msra.mxu1 %v3854_v36 }
 0x6ee   : > { %v1690_v48 = vpop.f32.mrf.mxu0  ;;  %v1703_v49 = vpop.f32.mrf.mxu1 }
 0x6ef   : > { %v1691_v50 = vadd.f32 %v3942_v47, %v1690_v48  ;;  %v3845_v47 = vld [vmem:[%s5000_s6 + $0xd8] sm:$0xff] }
 0x6f0   : > { %v3849_v48 = vld [vmem:[%s5000_s6 + $0xf8] sm:$0xff] }
 0x6f1   : > { %v1704_v51 = vadd.f32 %v1703_v49, %v1691_v50  ;;  %v3844_v49 = vld [vmem:[%s5000_s6 + $0xd0] sm:$0xff] }
 0x6f2   : > { %v3848_v50 = vld [vmem:[%s5000_s6 + $0xf0] sm:$0xff] }
 0x6f3   : > { %v4604_v52 = vadd.f32 %v1704_v51, %v4480_v31  ;;  %v3821_v31 = vld [vmem:[%s4999_s5 + $0x98] sm:$0xff]  ;;  %v3843_v51 = vld [vmem:[%s5000_s6 + $0xc8] sm:$0xff] }
 0x6f4   : > { %1807 = vmatpush.bf16.msra.mxu2 %v3821_v31  ;;  %v3863_v31 = vld [vmem:[%s5001_s7 + $0xe8] sm:$0xff] }
 0x6f5   : > { %v1712_v53 = vsel %vm624_vm1, %v4604_v52, 0.0 }
 0x6f6   : > { %v1692_v54 = vpop.f32.mrf.mxu0  ;;  %v1705_v55 = vpop.f32.mrf.mxu1  ;;  %1713 = vadd.xlane.f32.xlu2 %v1712_v53  ;;  %v3847_v53 = vld [vmem:[%s5000_s6 + $0xe8] sm:$0xff] }
 0x6f7   : > { %v3842_v54 = vld [vmem:[%s5000_s6 + $0xc0] sm:$0xff] }
 0x6f8   : > { %1808 = vmatpush.bf16.msra.mxu2 %v3820_v0  ;;  %v3846_v55 = vld [vmem:[%s5000_s6 + $0xe0] sm:$0xff] }
 0x6fc   : > { %1809 = vmatpush.bf16.msra.mxu2 %v3819_v4 }
 0x700   : > { %1810 = vmatpush.bf16.msra.mxu2 %v3818_v8 }
 0x704   : > { %1881 = vmatpush.bf16.msrb.mxu2 %v3829_v12 }
 0x708   : > { %1882 = vmatpush.bf16.msrb.mxu2 %v3828_v20 }
 0x70c   : > { %1883 = vmatpush.bf16.msrb.mxu2 %v3827_v26 }
 0x710   : > { %1884 = vmatpush.bf16.msrb.mxu2 %v3826_v33 }
 0x769   : > { %v1714_v56 = vpop.xlane.xlu2 %1713 }
 0x76a   : > { %v1715_v57 = vmul.f32 %v1714_v56, %v4270_v32  ;;  %v3861_v56 = vld [vmem:[%s5001_s7 + $0xd8] sm:$0xff] }
 0x76c   : > { %v4610_v58 = vsub.f32 %v4604_v52, %v1715_v57  ;;  %v3865_v57 = vld [vmem:[%s5001_s7 + $0xf8] sm:$0xff] }
 0x76e   : > { %v1717_v59 = vmul.f32 %v4610_v58, %v4610_v58 }
 0x770   : > { %v1718_v60 = vsel %vm624_vm1, %v1717_v59, 0.0  ;;  %v3864_v59 = vld [vmem:[%s5001_s7 + $0xf0] sm:$0xff] }
 0x771   : > { %1719 = vadd.xlane.f32.xlu1 %v1718_v60  ;;  %v3859_v60 = vld [vmem:[%s5001_s7 + $0xc8] sm:$0xff] }
 0x7e4   : > { %v1720_v15 = vpop.xlane.xlu1 %1719 }
 0x7e5   : > { %v1721_v17 = vmul.f32 %v1720_v15, %v4270_v32 }
 0x7e7   : > { %v1722_v25 = vadd.f32 1e-05, %v1721_v17 }
 0x7e9   : > { %3973 = vrsqrt.f32 %v1722_v25  ;;  %vm1729_vm14 = vweird.f32 %v1722_v25 }
 0x7ef   : > { %v3974_v37 = vpop.eup %3973 }
 0x7f0   : > { %v1724_v18 = vmul.f32 %v3974_v37, %v1722_v25  ;;  %vm1730_vm13 = vweird.f32 %v3974_v37 }
 0x7f1   : > { %vm1731_vm15 = vmor %vm1729_vm14, %vm1730_vm13 }
 0x7f2   : > { %v1725_v19 = vmul.f32 %v3974_v37, %v1724_v18 }
 0x7f4   : > { %v1726_v38 = vmul.f32 0.5, %v1725_v19 }
 0x7f6   : > { %v1727_v39 = vsub.f32 1.5, %v1726_v38 }
 0x7f8   : > { %v1728_v24 = vmul.f32 %v3974_v37, %v1727_v39 }
 0x7fa   : > { %v1732_v41 = vsel %vm1731_vm15, %v3974_v37, %v1728_v24 }
 0x7fb   : > { %v1733_v43 = vmul.f32 %v1732_v41, %v4610_v58  ;;  %v3860_v58 = vld [vmem:[%s5001_s7 + $0xd0] sm:$0xff] }
 0x7fd   : > { %v1737_v44 = vmul.f32 %v3943_v40, %v1733_v43 }
 0x7ff   : > { %v1741_v45 = vadd.f32 %v3944_v42, %v1737_v44 }
 0x801   : > { %v1742_v46 = vpack.c.bf16 %v1741_v45, %v1741_v45 }
 0x803   : > { %3323 = vmatmul.msk.bf16.vlgmr.msra.gmra.mxu2 %vm624_vm1, %v1742_v46  ;;  %3340 = vmatmul.msk.bf16.vlgmr.msra.gmra.mxu3 %vm624_vm1, %v1742_v46 }
 0x804   : > { %3423 = vmatmul.msk.bf16.vlgmr.msra.gmra.mxu0 %vm624_vm1, %v1742_v46  ;;  %3440 = vmatmul.msk.bf16.vlgmr.msrb.gmra.mxu1 %vm624_vm1, %v1742_v46 }
 0x805   : > { %2062 = vmatpush.bf16.msra.mxu2 %v3845_v47  ;;  %2099 = vmatpush.bf16.msra.mxu3 %v3849_v48 }
 0x809   : > { %2063 = vmatpush.bf16.msra.mxu2 %v3844_v49  ;;  %2100 = vmatpush.bf16.msra.mxu3 %v3848_v50 }
 0x80d   : > { %2064 = vmatpush.bf16.msra.mxu2 %v3843_v51  ;;  %2101 = vmatpush.bf16.msra.mxu3 %v3847_v53 }
 0x811   : > { %2065 = vmatpush.bf16.msra.mxu2 %v3842_v54  ;;  %2102 = vmatpush.bf16.msra.mxu3 %v3846_v55 }
 0x813   : > { %3357 = vmatmul.msk.bf16.vlgmr.msrb.gmra.mxu2 %vm624_vm1, %v1742_v46  ;;  %3374 = vmatmul.msk.bf16.vlgmr.msrb.gmra.mxu3 %vm624_vm1, %v1742_v46 }
 0x814   : > { %3523 = vmatmul.msk.bf16.vlgmr.msrb.gmra.mxu0 %vm624_vm1, %v1742_v46  ;;  %3540 = vmatmul.msk.bf16.vlgmr.msra.gmra.mxu1 %vm624_vm1, %v1742_v46 }
 0x815   : > { %2243 = vmatpush.bf16.msrb.mxu2 %v3861_v56  ;;  %2280 = vmatpush.bf16.msrb.mxu3 %v3865_v57 }
 0x819   : > { %2244 = vmatpush.bf16.msrb.mxu2 %v3860_v58  ;;  %2281 = vmatpush.bf16.msrb.mxu3 %v3864_v59 }
 0x81d   : > { %2245 = vmatpush.bf16.msrb.mxu2 %v3859_v60  ;;  %2282 = vmatpush.bf16.msrb.mxu3 %v3863_v31 }
 0x821   : > { %2246 = vmatpush.bf16.msrb.mxu2 %v3858_v61  ;;  %2283 = vmatpush.bf16.msrb.mxu3 %v3862_v62 }
 0x823   : > { %3457 = vmatmul.msk.bf16.vlgmr.msra.gmra.mxu2 %vm624_vm1, %v1742_v46  ;;  %3474 = vmatmul.msk.bf16.vlgmr.msra.gmra.mxu3 %vm624_vm1, %v1742_v46 }
 0x833   : > { %3557 = vmatmul.msk.bf16.vlgmr.msrb.gmra.mxu2 %vm624_vm1, %v1742_v46  ;;  %3574 = vmatmul.msk.bf16.vlgmr.msrb.gmra.mxu3 %vm624_vm1, %v1742_v46 }
 0x881   : > { %v1993_v63 = vpop.f32.mrf.mxu0  ;;  %v2030_v0 = vpop.f32.mrf.mxu1 }
 0x882   : > { %v2293_v1 = vpack.c.bf16 %v1993_v63, %v1993_v63  ;;  %v2294_v2 = vpack.c.bf16 %v2030_v0, %v2030_v0 }
 0x884   : > { %v2301_v3 = vsel %vm1214_vm6, %v2293_v1, 0  ;;  %v2320_v4 = vsel %vm1214_vm6, %v2294_v2, 0 }
 0x885   : > { %2310 = vmatpush.bf16.xpose.msra.mxu0 %v2301_v3  ;;  %2329 = vmatpush.bf16.xpose.msrb.mxu1 %v2320_v4 }
 0x886   : > { %v1812_v5 = vpop.f32.mrf.mxu2  ;;  %v1849_v6 = vpop.f32.mrf.mxu3 }
 0x887   : > { %v2289_v9 = vpack.c.bf16 %v1812_v5, %v1812_v5  ;;  %v2290_v10 = vpack.c.bf16 %v1849_v6, %v1849_v6 }
 0x889   : > { %v1995_v7 = vpop.f32.mrf.mxu0  ;;  %v2032_v8 = vpop.f32.mrf.mxu1 }
 0x88c   : > { %3575 = vmatmul.msk.bf16.vlgmr.msra.gmra.mxu0 %vm1214_vm6, %v2289_v9  ;;  %3576 = vmatmul.msk.bf16.vlgmr.msrb.gmra.mxu1 %vm1214_vm6, %v2290_v10 }
 0x88e   : > { %v1814_v11 = vpop.f32.mrf.mxu2  ;;  %v1851_v12 = vpop.f32.mrf.mxu3 }
 0x891   : > { %v2174_v13 = vpop.f32.mrf.mxu0  ;;  %v2211_v14 = vpop.f32.mrf.mxu1 }
 0x892   : > { %v2421_v15 = vpack.c.bf16 %v2174_v13, %v2174_v13  ;;  %v2422_v16 = vpack.c.bf16 %v2211_v14, %v2211_v14 }
 0x894   : > { %v2429_v17 = vsel %vm1347_vm7, %v2421_v15, 0  ;;  %v2448_v20 = vsel %vm1347_vm7, %v2422_v16, 0 }
 0x895   : > { %2438 = vmatpush.bf16.msrb.mxu0 %v2429_v17  ;;  %2457 = vmatpush.bf16.msra.mxu1 %v2448_v20 }
 0x896   : > { %v1886_v21 = vpop.f32.mrf.mxu2  ;;  %v1923_v22 = vpop.f32.mrf.mxu3 }
 0x897   : > { %v2291_v19 = vpack.c.bf16 %v1886_v21, %v1886_v21  ;;  %v2292_v38 = vpack.c.bf16 %v1923_v22, %v1923_v22 }
 0x899   : > { %v2176_v23 = vpop.f32.mrf.mxu0  ;;  %v2213_v25 = vpop.f32.mrf.mxu1 }
 0x89e   : > { %v1888_v26 = vpop.f32.mrf.mxu2  ;;  %v1925_v27 = vpop.f32.mrf.mxu3 }
 0x8a6   : > { %v2067_v28 = vpop.f32.mrf.mxu2  ;;  %v2104_v30 = vpop.f32.mrf.mxu3 }
 0x8a7   : > { %v2295_v33 = vpack.c.bf16 %v2067_v28, %v2067_v28  ;;  %v2296_v34 = vpack.c.bf16 %v2104_v30, %v2104_v30 }
 0x8a9   : > { %v2339_v35 = vsel %vm1214_vm6, %v2295_v33, 0  ;;  %v2358_v36 = vsel %vm1214_vm6, %v2296_v34, 0 }
 0x8aa   : > { %2348 = vmatpush.bf16.xpose.msra.mxu2 %v2339_v35  ;;  %2367 = vmatpush.bf16.xpose.msra.mxu3 %v2358_v36 }
 0x8ae   : > { %v2069_v37 = vpop.f32.mrf.mxu2  ;;  %v2106_v18 = vpop.f32.mrf.mxu3 }
 0x8b1   : > { %3577 = vmatmul.msk.bf16.vlgmr.msra.gmra.mxu2 %vm1214_vm6, %v2291_v19  ;;  %3578 = vmatmul.msk.bf16.vlgmr.msra.gmra.mxu3 %vm1214_vm6, %v2292_v38 }
 0x8b6   : > { %v2248_v39 = vpop.f32.mrf.mxu2  ;;  %v2285_v24 = vpop.f32.mrf.mxu3 }
 0x8b7   : > { %v2423_v40 = vpack.c.bf16 %v2248_v39, %v2248_v39  ;;  %v2424_v41 = vpack.c.bf16 %v2285_v24, %v2285_v24 }
 0x8b9   : > { %v2467_v42 = vsel %vm1347_vm7, %v2423_v40, 0  ;;  %v2486_v43 = vsel %vm1347_vm7, %v2424_v41, 0 }
 0x8ba   : > { %2476 = vmatpush.bf16.msrb.mxu2 %v2467_v42  ;;  %2495 = vmatpush.bf16.msrb.mxu3 %v2486_v43 }
 0x8be   : > { %v2250_v44 = vpop.f32.mrf.mxu2  ;;  %v2287_v45 = vpop.f32.mrf.mxu3 }
 0x909   : > { %v2312_v46 = vpop.f32.mrf.mxu0  ;;  %v2331_v47 = vpop.f32.mrf.mxu1 }
 0x90a   : > { %v2313_v48 = vadd.f32 %v2312_v46, %v4457_v29  ;;  %v2332_v59 = vadd.f32 %v2331_v47, %v4457_v29 }
 0x90c   : > { %v2373_v49 = vsel %vm1291_vm9, %v2313_v48, -inf  ;;  %v2376_v61 = vsel %vm1291_vm9, %v2332_v59, -inf }
 0x90d   : > { %2374 = vmax.xlane.f32.xlu1 %v2373_v49 }
 0x911   : > { %v2314_v50 = vpop.f32.mrf.mxu0  ;;  %v2333_v51 = vpop.f32.mrf.mxu1 }
 0x934   : > { %v2350_v53 = vpop.f32.mrf.mxu2  ;;  %v2369_v54 = vpop.f32.mrf.mxu3 }
 0x935   : > { %v2351_v55 = vadd.f32 %v2350_v53, %v4457_v29  ;;  %v2370_v56 = vadd.f32 %v2369_v54, %v4457_v29 }
 0x937   : > { %v2382_v57 = vsel %vm1291_vm9, %v2370_v56, -inf  ;;  %v2379_v58 = vsel %vm1291_vm9, %v2351_v55, -inf }
 0x938   : > { %2383 = vmax.xlane.f32.xlu0 %v2382_v57  ;;  %2380 = vmax.xlane.f32.xlu2 %v2379_v58 }
 0x93c   : > { %v2352_v60 = vpop.f32.mrf.mxu2  ;;  %v2371_v31 = vpop.f32.mrf.mxu3 }
 0x93d   : > { %v3872_v60 = vld [vmem:[%s5004_s10 + $0x74] sm:$0xf] }
 0x940   : > { %2377 = vmax.xlane.f32.xlu2 %v2376_v61  ;;  %v3622_v61 = vld [vmem:[%s5004_s10 + $0x78] sm:$0xf0] }
 0x980   : > { %v2375_v62 = vpop.xlane.xlu1 %2374 }
 0x981   : > { %v2385_v63 = vsub.f32 %v2313_v48, %v2375_v62  ;;  %v3625_v62 = vor.u32 %v3872_v60, %v3622_v61 }
 0x983   : > { %v2389_v0 = vmul.f32 1.442695, %v2385_v63  ;;  %2620 = vmatpush.bf16.msrb.mxu1 %v3625_v62  ;;  %v3612_v63 = vld [vmem:[%s5004_s10 + $0x60] sm:$0xf] }
 0x985   : > { %3975 = vpow2.f32 %v2389_v0  ;;  %v3871_v0 = vld [vmem:[%s5004_s10 + $0x64] sm:$0xf0] }
 0x98b   : > { %v3976_v1 = vpop.eup %3975 }
 0x98c   : > { %v2397_v2 = vsel %vm1291_vm9, %v3976_v1, 0.0 }
 0x98d   : > { %2398 = vadd.xlane.f32.xlu2 %v2397_v2  ;;  %v3613_v2 = vor.u32 %v3871_v0, %v3612_v63  ;;  %v3947_v0 = vld [vmem:[%s5007_s13 + $0x1] ss:$0 sm:$0xff] }
 0x9ab   : > { %v2384_v3 = vpop.xlane.xlu0 %2383  ;;  %v2381_v4 = vpop.xlane.xlu2 %2380 }
 0x9ac   : > { %v2388_v5 = vsub.f32 %v2370_v56, %v2384_v3  ;;  %v2387_v6 = vsub.f32 %v2351_v55, %v2381_v4  ;;  %v3614_v3 = vld [vmem:[%s5004_s10 + $0x68] sm:$0xf0] }
 0x9ae   : > { %v2395_v7 = vmul.f32 1.442695, %v2388_v5  ;;  %v2393_v8 = vmul.f32 1.442695, %v2387_v6  ;;  %v3604_v5 = vld [vmem:[%s5004_s10 + $0x50] sm:$0xf] }
 0x9af   : > { %v3869_v6 = vld [vmem:[%s5004_s10 + $0x54] sm:$0xf0] }
 0x9b0   : > { %3977 = vpow2.f32 %v2395_v7  ;;  %v3868_v7 = vld [vmem:[%s5004_s10 + $0x54] sm:$0xf] }
 0x9b1   : > { %3979 = vpow2.f32 %v2393_v8  ;;  %v3605_v8 = vor.u32 %v3869_v6, %v3604_v5 }
 0x9b3   : > { %v2378_v29 = vpop.xlane.xlu2 %2377 }
 0x9b4   : > { %v2386_v9 = vsub.f32 %v2332_v59, %v2378_v29  ;;  %v3873_v59 = vld [vmem:[%s5004_s10 + $0x74] sm:$0xf0]  ;;  %v3606_v29 = vld [vmem:[%s5004_s10 + $0x58] sm:$0xf0] }
 0x9b6   : > { %v3978_v10 = vpop.eup %3977  ;;  %v2391_v11 = vmul.f32 1.442695, %v2386_v9  ;;  %v3609_v9 = vor.u32 %v3868_v7, %v3606_v29 }
 0x9b7   : > { %v3980_v12 = vpop.eup %3979  ;;  %v2406_v13 = vsel %vm1291_vm9, %v3978_v10, 0.0 }
 0x9b8   : > { %3981 = vpow2.f32 %v2391_v11  ;;  %2407 = vadd.xlane.f32.xlu1 %v2406_v13  ;;  %v2403_v14 = vsel %vm1291_vm9, %v3980_v12, 0.0  ;;  %v3867_v11 = vld [vmem:[%s5004_s10 + $0x44] sm:$0xf0] }
 0x9b9   : > { %2404 = vadd.xlane.f32.xlu0 %v2403_v14  ;;  %v3598_v14 = vld [vmem:[%s5004_s10 + $0x48] sm:$0xf0] }
 0x9be   : > { %v3982_v15 = vpop.eup %3981 }
 0x9bf   : > { %v2400_v16 = vsel %vm1291_vm9, %v3982_v15, 0.0 }
 0x9c1   : > { %2401 = vadd.xlane.f32.xlu0 %v2400_v16  ;;  %v3881_v16 = vld [vmem:[%s5006_s12 + $0xb8] sm:$0xff] }
 0x9c2   : > { %2767 = vmatpush.bf16.msra.mxu2 %v3881_v16 }
 0xa00   : > { %v2399_v17 = vpop.xlane.xlu2 %2398 }
 0xa01   : > { %3983 = vrcp.f32 %v2399_v17  ;;  %v3889_v17 = vld [vmem:[%s5006_s12 + $0xf8] sm:$0xff] }
 0xa02   : > { %2780 = vmatpush.bf16.msra.mxu3 %v3889_v17 }
 0xa07   : > { %v3984_v20 = vpop.eup %3983 }
 0xa08   : > { %v2413_v21 = vmul.f32 %v3984_v20, %v3976_v1  ;;  %v3870_v1 = vld [vmem:[%s5004_s10 + $0x64] sm:$0xf] }
 0xa09   : > { %v3617_v4 = vor.u32 %v3870_v1, %v3614_v3 }
 0xa0a   : > { %v2417_v22 = vpack.c.bf16 %v2413_v21, %v2413_v21 }
 0xa0b   : > { %2621 = vmatpush.bf16.msrb.mxu1 %v3617_v4 }
 0xa0c   : > { %3579 = vmatmul.msk.bf16.vlgmr.msrb.gmra.mxu0 %vm1291_vm9, %v2417_v22  ;;  %v3880_v22 = vld [vmem:[%s5006_s12 + $0xb0] sm:$0xff] }
 0xa0d   : > { %2768 = vmatpush.bf16.msra.mxu2 %v3880_v22 }
 0xa0f   : > { %2622 = vmatpush.bf16.msrb.mxu1 %v3609_v9 }
 0xa2b   : > { %v2408_v23 = vpop.xlane.xlu1 %2407 }
 0xa2c   : > { %3985 = vrcp.f32 %v2408_v23  ;;  %v2405_v25 = vpop.xlane.xlu0 %2404  ;;  %v3888_v23 = vld [vmem:[%s5006_s12 + $0xf0] sm:$0xff] }
 0xa2d   : > { %3987 = vrcp.f32 %v2405_v25  ;;  %2781 = vmatpush.bf16.msra.mxu3 %v3888_v23 }
 0xa32   : > { %v3986_v26 = vpop.eup %3985 }
 0xa33   : > { %v3988_v27 = vpop.eup %3987  ;;  %v2416_v28 = vmul.f32 %v3986_v26, %v3978_v10  ;;  %v3596_v10 = vld [vmem:[%s5004_s10 + $0x40] sm:$0xf]  ;;  %v3879_v26 = vld [vmem:[%s5006_s12 + $0xa8] sm:$0xff] }
 0xa34   : > { %v2415_v30 = vmul.f32 %v3988_v27, %v3980_v12  ;;  %v2402_v33 = vpop.xlane.xlu0 %2401  ;;  %v3866_v12 = vld [vmem:[%s5004_s10 + $0x44] sm:$0xf]  ;;  %v3597_v13 = vor.u32 %v3867_v11, %v3596_v10  ;;  %v3887_v27 = vld [vmem:[%s5006_s12 + $0xe8] sm:$0xff]  ;;  %2769 = vmatpush.bf16.msra.mxu2 %v3879_v26 }
 0xa35   : > { %v2420_v34 = vpack.c.bf16 %v2416_v28, %v2416_v28  ;;  %3989 = vrcp.f32 %v2402_v33  ;;  %2782 = vmatpush.bf16.msra.mxu3 %v3887_v27  ;;  %v3878_v28 = vld [vmem:[%s5006_s12 + $0xa0] sm:$0xff] }
 0xa36   : > { %v2419_v35 = vpack.c.bf16 %v2415_v30, %v2415_v30  ;;  %v3886_v30 = vld [vmem:[%s5006_s12 + $0xe0] sm:$0xff] }
 0xa37   : > { %3582 = vmatmul.msk.bf16.vlgmr.msrb.gmra.mxu3 %vm1291_vm9, %v2420_v34 }
 0xa38   : > { %3581 = vmatmul.msk.bf16.vlgmr.msrb.gmra.mxu2 %vm1291_vm9, %v2419_v35  ;;  %v3877_v35 = vld [vmem:[%s5006_s12 + $0x98] sm:$0xff] }
 0xa39   : > { %2770 = vmatpush.bf16.msra.mxu2 %v3878_v28  ;;  %2783 = vmatpush.bf16.msra.mxu3 %v3886_v30  ;;  %v3948_v28 = vld [vmem:[%s5008_s14] ss:$0 sm:$0xff] }
 0xa3b   : > { %v3990_v36 = vpop.eup %3989 }
 0xa3c   : > { %v2414_v37 = vmul.f32 %v3990_v36, %v3982_v15  ;;  %v3601_v15 = vor.u32 %v3866_v12, %v3598_v14  ;;  %v3885_v36 = vld [vmem:[%s5006_s12 + $0xd8] sm:$0xff]  ;;  %v3891_v14 = vld [vmem:[%s5010_s16 + $0x8] sm:$0xff] }
 0xa3d   : > { %2771 = vmatpush.bf16.msra.mxu2 %v3877_v35  ;;  %2784 = vmatpush.bf16.msra.mxu3 %v3885_v36 }
 0xa3e   : > { %v2418_v18 = vpack.c.bf16 %v2414_v37, %v2414_v37  ;;  %2623 = vmatpush.bf16.msrb.mxu1 %v3601_v15  ;;  %v3890_v15 = vld [vmem:[%s5010_s16] sm:$0xff] }
 0xa40   : > { %3580 = vmatmul.msk.bf16.vlgmr.msra.gmra.mxu1 %vm1291_vm9, %v2418_v18 }
 0xa89   : > { %v2440_v19 = vpop.f32.mrf.mxu0 }
 0xa8a   : > { %v2501_v41 = vsel %vm624_vm1, %v2440_v19, 0.0  ;;  %v3876_v19 = vld [vmem:[%s5006_s12 + $0x90] sm:$0xff] }
 0xa8b   : > { %2772 = vmatpush.bf16.msra.mxu2 %v3876_v19 }
 0xa91   : > { %v2442_v38 = vpop.f32.mrf.mxu0 }
 0xa92   : > { %v3884_v38 = vld [vmem:[%s5006_s12 + $0xd0] sm:$0xff] }
 0xa93   : > { %2785 = vmatpush.bf16.msra.mxu3 %v3884_v38 }
 0xaba   : > { %v2497_v39 = vpop.f32.mrf.mxu3 }
 0xabb   : > { %v2478_v24 = vpop.f32.mrf.mxu2  ;;  %v2506_v46 = vsel %vm624_vm1, %v2497_v39, 0.0 }
 0xabc   : > { %v2504_v44 = vsel %vm624_vm1, %v2478_v24, 0.0 }
 0xabd   : > { %v2459_v40 = vpop.f32.mrf.mxu1 }
 0xabe   : > { %v2502_v42 = vsel %vm624_vm1, %v2459_v40, 0.0  ;;  %v3945_v40 = vld [vmem:[%s5002_s8 + $0x1] ss:$0 sm:$0xff] }
 0xabf   : > { %v2503_v43 = vadd.f32 %v2502_v42, %v2501_v41 }
 0xac1   : > { %v2505_v45 = vadd.f32 %v2504_v44, %v2503_v43  ;;  %v3946_v43 = vld [vmem:[%s5003_s9 + $0x1] ss:$0 sm:$0xff] }
 0xac2   : > { %v2499_v47 = vpop.f32.mrf.mxu3 }
 0xac3   : > { %v2507_v48 = vadd.f32 %v2506_v46, %v2505_v45  ;;  %v2480_v49 = vpop.f32.mrf.mxu2  ;;  %v3875_v47 = vld [vmem:[%s5006_s12 + $0x88] sm:$0xff] }
 0xac4   : > { %2773 = vmatpush.bf16.msra.mxu2 %v3875_v47  ;;  %v3874_v49 = vld [vmem:[%s5006_s12 + $0x80] sm:$0xff] }
 0xac5   : > { %v2461_v50 = vpop.f32.mrf.mxu1  ;;  %v4812_v51 = vadd.f32 %v2507_v48, %v4604_v52  ;;  %v3620_v52 = vld [vmem:[%s5004_s10 + $0x70] sm:$0xf]  ;;  %v3883_v48 = vld [vmem:[%s5006_s12 + $0xc8] sm:$0xff] }
 0xac6   : > { %v3621_v31 = vor.u32 %v3873_v59, %v3620_v52  ;;  %2786 = vmatpush.bf16.msra.mxu3 %v3883_v48  ;;  %v3882_v50 = vld [vmem:[%s5006_s12 + $0xc0] sm:$0xff] }
 0xac7   : > { %v2513_v53 = vsel %vm624_vm1, %v4812_v51, 0.0 }
 0xac8   : > { %2514 = vadd.xlane.f32.xlu1 %v2513_v53  ;;  %2607 = vmatpush.bf16.msra.mxu0 %v3621_v31  ;;  %v3593_v53 = vld [vmem:[%s5005_s11 + $0x2] sm:$0x3] }
 0xac9   : > { %2774 = vmatpush.bf16.msra.mxu2 %v3874_v49 }
 0xaca   : > { %2787 = vmatpush.bf16.msra.mxu3 %v3882_v50 }
 0xacc   : > { %2608 = vmatpush.bf16.msra.mxu0 %v3613_v2 }
 0xad0   : > { %2609 = vmatpush.bf16.msra.mxu0 %v3605_v8 }
 0xad4   : > { %2610 = vmatpush.bf16.msra.mxu0 %v3597_v13  ;;  %v3893_v13 = vld [vmem:[%s5010_s16 + $0x18] sm:$0xff] }
 0xad8   : > { %2870 = vmatpush.bf16.msrb.mxu0 %v3893_v13 }
 0xb3b   : > { %v2515_v54 = vpop.xlane.xlu1 %2514 }
 0xb3c   : > { %v2516_v55 = vmul.f32 %v2515_v54, %v4270_v32  ;;  %v2556_v54 = vperm.slane %v3593_v53, 0 }
 0xb3e   : > { %v4818_v56 = vsub.f32 %v4812_v51, %v2516_v55  ;;  %v2557_v55 = vperm.slane %v3593_v53, 1 }
 0xb40   : > { %v2518_v57 = vmul.f32 %v4818_v56, %v4818_v56 }
 0xb42   : > { %v2519_v58 = vsel %vm624_vm1, %v2518_v57, 0.0 }
 0xb43   : > { %2520 = vadd.xlane.f32.xlu2 %v2519_v58 }
 0xbb6   : > { %v2521_v20 = vpop.xlane.xlu2 %2520 }
 0xbb7   : > { %v2522_v21 = vmul.f32 %v2521_v20, %v4270_v32 }
 0xbb9   : > { %v2523_v25 = vadd.f32 1e-05, %v2522_v21 }
 0xbbb   : > { %3991 = vrsqrt.f32 %v2523_v25  ;;  %vm2530_vm2 = vweird.f32 %v2523_v25 }
 0xbc1   : > { %v3992_v33 = vpop.eup %3991 }
 0xbc2   : > { %v2525_v34 = vmul.f32 %v3992_v33, %v2523_v25  ;;  %vm2531_vm0 = vweird.f32 %v3992_v33 }
 0xbc3   : > { %vm2532_vm3 = vmor %vm2530_vm2, %vm2531_vm0 }
 0xbc4   : > { %v2526_v37 = vmul.f32 %v3992_v33, %v2525_v34 }
 0xbc6   : > { %v2527_v18 = vmul.f32 0.5, %v2526_v37  ;;  %v3950_v37 = vld [vmem:[%s5046_s25] ss:$0 sm:$0xff] }
 0xbc8   : > { %v2528_v39 = vsub.f32 1.5, %v2527_v18 }
 0xbca   : > { %v2529_v24 = vmul.f32 %v3992_v33, %v2528_v39 }
 0xbcc   : > { %v2533_v41 = vsel %vm2532_vm3, %v3992_v33, %v2529_v24 }
 0xbcd   : > { %v2534_v42 = vmul.f32 %v2533_v41, %v4818_v56 }
 0xbcf   : > { %v2538_v44 = vmul.f32 %v3945_v40, %v2534_v42 }
 0xbd1   : > { %v2542_v45 = vadd.f32 %v3946_v43, %v2538_v44 }
 0xbd3   : > { %v2543_v46 = vpack.c.bf16 %v2542_v45, %v2542_v45 }
 0xbd5   : > { %3626 = vmatmul.msk.bf16.vlgmr.msra.gmra.mxu0 %vm624_vm1, %v2543_v46  ;;  %3627 = vmatmul.msk.bf16.vlgmr.msrb.gmra.mxu1 %vm624_vm1, %v2543_v46 }
 0xc52   : > { %v2612_v56 = vpop.f32.mrf.mxu0  ;;  %v2625_v57 = vpop.f32.mrf.mxu1 }
 0xc53   : > { %v2613_v58 = vadd.f32 %v2612_v56, %v2556_v54  ;;  %v2626_v52 = vadd.f32 %v2625_v57, %v2557_v55 }
 0xc55   : > { %v2629_v59 = vmax.f32 %v2613_v58, 0.0  ;;  %v2630_v60 = vmax.f32 %v2626_v52, 0.0 }
 0xc57   : > { %v2631_v31 = vpack.c.bf16 %v2629_v59, %v2629_v59  ;;  %v2632_v61 = vpack.c.bf16 %v2630_v60, %v2630_v60 }
 0xc59   : > { %2775 = vmatmul.bf16.vlgmr.msra.gmra.mxu2 %v2631_v31  ;;  %2788 = vmatmul.bf16.vlgmr.msra.gmra.mxu3 %v2632_v61 }
 0xc5a   : > { %v2614_v62 = vpop.f32.mrf.mxu0  ;;  %v2627_v63 = vpop.f32.mrf.mxu1 }
 0xcdc   : > { %v2776_v1 = vpop.f32.mrf.mxu2  ;;  %v2789_v2 = vpop.f32.mrf.mxu3 }
 0xcdd   : > { %v2777_v3 = vadd.f32 %v3947_v0, %v2776_v1 }
 0xcdf   : > { %v2790_v4 = vadd.f32 %v2789_v2, %v2777_v3 }
 0xce1   : > { %v2793_v5 = vadd.f32 %v2790_v4, %v4812_v51  ;;  %v3892_v51 = vld [vmem:[%s5010_s16 + $0x10] sm:$0xff] }
 0xce2   : > { %2871 = vmatpush.bf16.msrb.mxu0 %v3892_v51 }
 0xce3   : > { %v2796_v6 = vsel %vm624_vm1, %v2793_v5, 0.0 }
 0xce4   : > { %v2778_v7 = vpop.f32.mrf.mxu2  ;;  %v2791_v8 = vpop.f32.mrf.mxu3  ;;  %2797 = vadd.xlane.f32.xlu0 %v2796_v6 }
 0xce6   : > { %2872 = vmatpush.bf16.msrb.mxu0 %v3891_v14 }
 0xcea   : > { %2873 = vmatpush.bf16.msrb.mxu0 %v3890_v15 }
 0xd57   : > { %v2798_v29 = vpop.xlane.xlu0 %2797 }
 0xd58   : > { %v2799_v9 = vmul.f32 %v2798_v29, %v4270_v32 }
 0xd5a   : > { %v2800_v10 = vsub.f32 %v2793_v5, %v2799_v9 }
 0xd5c   : > { %v2801_v11 = vmul.f32 %v2800_v10, %v2800_v10 }
 0xd5e   : > { %v2802_v12 = vsel %vm624_vm1, %v2801_v11, 0.0 }
 0xd5f   : > { %2803 = vadd.xlane.f32.xlu1 %v2802_v12 }
 0xdd2   : > { %v2804_v16 = vpop.xlane.xlu1 %2803 }
 0xdd3   : > { %v2805_v17 = vmul.f32 %v2804_v16, %v4270_v32  ;;  %v3949_v32 = vld [vmem:[%s5009_s15] ss:$0 sm:$0xff] }
 0xdd5   : > { %v2806_v20 = vadd.f32 1e-05, %v2805_v17 }
 0xdd7   : > { %3993 = vrsqrt.f32 %v2806_v20  ;;  %vm2813_vm5 = vweird.f32 %v2806_v20 }
 0xddd   : > { %v3994_v21 = vpop.eup %3993 }
 0xdde   : > { %v2808_v22 = vmul.f32 %v3994_v21, %v2806_v20  ;;  %vm2814_vm4 = vweird.f32 %v3994_v21 }
 0xddf   : > { %vm2815_vm6 = vmor %vm2813_vm5, %vm2814_vm4 }
 0xde0   : > { %v2809_v23 = vmul.f32 %v3994_v21, %v2808_v22 }
 0xde2   : > { %v2810_v25 = vmul.f32 0.5, %v2809_v23 }
 0xde4   : > { %v2811_v26 = vsub.f32 1.5, %v2810_v25 }
 0xde6   : > { %v2812_v27 = vmul.f32 %v3994_v21, %v2811_v26 }
 0xde8   : > { %v2816_v30 = vsel %vm2815_vm6, %v3994_v21, %v2812_v27 }
 0xde9   : > { %v2817_v33 = vmul.f32 %v2816_v30, %v2800_v10 }
 0xdeb   : > { %v2821_v34 = vmul.f32 %v3948_v28, %v2817_v33 }
 0xded   : > { %v2825_v35 = vadd.f32 %v3949_v32, %v2821_v34 }
 0xdef   : > { %v2826_v36 = vpack.c.bf16 %v2825_v35, %v2825_v35 }
 0xdf1   : > { %3741 = vmatmul.msk.bf16.vlgmr.msrb.gmra.mxu0 %vm624_vm1, %v2826_v36 }
 0xe6e   : > { %v2875_v18 = vpop.f32.mrf.mxu0 }
 0xe6f   : > { %v2876_v19 = vadd.f32 %v3950_v37, %v2875_v18 }
 0xe71   : > { %2879 = vst [vmem:[%s566_s19] sm:$0xff] %v2876_v19 }
 0xe72   : > { %4022 = shalt.err (!%p4019_p3)
}
 0xe73   : > { %3894 = dma.vmem_to_hbm [thread:$0]  (%p4196_p5), %s2894_s20, 128, %s2896_s29, %s2881_s3  }
 0xe76   : > { %v2877_v38 = vpop.f32.mrf.mxu0 }
 0xe77 PF: > { %s5047_s27 = sld [smem:[#allocation7_spill]] }
 0xe78   : > { %s5048_s2 = sld [smem:[#allocation5_spill]] }
 0xe7d   : > { %p3900_p4 = scmp.ge.s32.totalorder %s5047_s27, 2 }
 0xe7e   : > { %s2907_s25 = sand.u32 1, %s5048_s2  }
 0xe7f   : > { %p3897_p7 = pnand %p3900_p4, %p4200_p6  ;;  %s2908_s19 = scalar_lea.sflag [#allocation3], %s2907_s25 }
 0xe81   : > { %p3898_p8 = pneg %p3897_p7 }
 0xe83   : > { %4040 = dma.done.wait (%p3898_p8), %s2908_s19, 128  }
 0xe84   : > { %4042 = vsyncadd (%p3898_p8), %s2908_s19, 4294967168  ;;  %s5050_s30 = sld [smem:[#allocation8_spill]]  ;;  %s5053_s27 = smov %s4049_s28 }
 0xe85   : > { %s5051_s4 = sld [smem:[#allocation6_spill]] }
 0xe86   : > { %s5052_s29 = sld [smem:[#allocation9_spill]] }
 0xe8a   : > { %p28_p9 = scmp.ge.s32.totalorder %s5050_s30, 4  }
 0xe8b   : > { %s5054_s28 = smov %s5051_s4 }
 0xe8c   :  { %30 = sbr.rel (!%p28_p9) target bundleno = 11 (0xb), region = 138 }
 0xe91   :  { %2914 = vsyncpa [#allocation3], 1 }
 0xe92   :  { %2916 = vsyncpa [#allocation3 + $0x1], 1 }

</bundles_post_ra>
